<compile_context>
chip_gen: v7x
topology: tpu7x:2x2x1
jax: 0.10.0
libtpu: 0.0.40
codegen_flags: <defaults>
</compile_context>

<pallas_src>
import re

import jax
import jax.numpy as jnp
from jax.experimental import pallas as pl
from jax.experimental.pallas import tpu as pltpu


def _round_up(x, m):
    return (x + m - 1) // m * m


def _tpu_generation():
    """Best-effort TPU generation (5, 6, 7, ...). Defaults to 6."""
    try:
        kind = jax.devices()[0].device_kind
        m = re.search(r"(\d+)", kind)
        if m:
            return int(m.group(1))
    except Exception:
        pass
    return 6


def _defaults_for_gen(gen):
    """Returns (tm_default, ti_default, ti_alignment, vmem_cap_bytes)."""
    if gen >= 7:
        # v7x: 64 MiB physical VMEM per TC, 2 TCs, 3.2 TB/s HBM.
        return 512, 256, 256, 48 * 1024 * 1024
    if gen == 6:
        # v6e: 128 MiB physical VMEM, 918 TF/s bf16 -> needs big row tiles.
        return 1024, 512, 256, 100 * 1024 * 1024
    # v5e and older: 128 MiB VMEM, 4x128 MXU.
    return 512, 512, 128, 100 * 1024 * 1024


def _choose_ti(I, requested, align):
    """Largest aligned divisor of I that is <= requested (falls back to any divisor)."""
    requested = max(1, min(requested, I))
    start = (requested // align) * align
    for cand in range(start, 0, -align):
        if I % cand == 0:
            return cand
    for cand in range(requested, 0, -1):
        if I % cand == 0:
            return cand
    return I


def _llama_mlp_kernel(x_ref, wgu_ref, wd_ref, o_ref, acc_ref):
    # x_ref  : (tm, H)        activation tile in its native dtype
    # wgu_ref: (1, H, 2*ti)   fused [gate | up] weight column tile (bf16)
    # wd_ref : (1, ti, H)     down_proj weight row tile (bf16)
    # o_ref  : (tm, H)        output tile (original activation dtype)
    # acc_ref: (tm, H)        f32 accumulator (scratch, resident across k)
    k = pl.program_id(1)

    @pl.when(k == 0)
    def _init():
        acc_ref[...] = jnp.zeros_like(acc_ref)

    ti = wd_ref.shape[1]
    # Cast the activation tile to the weight compute dtype *inside* the kernel.
    # x is only DMA'd once per m-tile (its index_map ignores k), so this avoids
    # a separate XLA cast pass and an extra HBM round trip over x.
    x = x_ref[...].astype(wgu_ref.dtype)
    # Fused gate/up projection: one bf16 MXU matmul, f32 accumulation.
    gate_up = jnp.dot(x, wgu_ref[0], preferred_element_type=jnp.float32)
    gate = gate_up[:, :ti]
    up = gate_up[:, ti:]
    # SiLU (x * sigmoid(x)) and gating multiply in f32 (VPU/EUP).
    hidden = (gate * jax.nn.sigmoid(gate)) * up
    # Partial down projection for this intermediate tile; accumulate in f32.
    acc_ref[...] += jnp.dot(hidden.astype(wd_ref.dtype), wd_ref[0],
                            preferred_element_type=jnp.float32)

    @pl.when(k == pl.num_programs(1) - 1)
    def _finalize():
        o_ref[...] = acc_ref[...].astype(o_ref.dtype)


def prepare_llama_mlp_weights(w_gate, w_up, w_down, *, ti=None,
                              compute_dtype=jnp.bfloat16):
    """One-time weight prep. Call at model-load time, NOT per forward call.

    w_gate, w_up : (I, H)  PyTorch nn.Linear layout (out_features, in_features)
    w_down       : (H, I)

    Returns:
      wgu: (nI, H, 2*ti)  per-I-tile fused [gate | up] weights (transposed)
      wd : (nI, ti, H)    per-I-tile down_proj weights (transposed)
    """
    I, H = w_gate.shape
    gen = _tpu_generation()
    _, ti_def, ti_align, _ = _defaults_for_gen(gen)
    ti = _choose_ti(I, ti if ti is not None else ti_def, ti_align)
    nI = I // ti

    wg_t = w_gate.T.astype(compute_dtype)   # (H, I)
    wu_t = w_up.T.astype(compute_dtype)     # (H, I)
    wd_t = w_down.T.astype(compute_dtype)   # (I, H)

    wg3 = wg_t.reshape(H, nI, ti)
    wu3 = wu_t.reshape(H, nI, ti)
    wgu = jnp.concatenate([wg3, wu3], axis=-1)   # (H, nI, 2*ti)
    wgu = jnp.transpose(wgu, (1, 0, 2))          # (nI, H, 2*ti)
    wd = wd_t.reshape(nI, ti, H)                 # (nI, ti, H)
    return wgu, wd


def llama_mlp_apply(x, wgu, wd, *, tm=None):
    """x: (B, S, H); wgu/wd from prepare_llama_mlp_weights. Returns (B, S, H)."""
    B, S, H = x.shape
    nI, _, two_ti = wgu.shape
    ti = two_ti // 2
    I = nI * ti
    w_dtype = wgu.dtype
    out_dtype = x.dtype

    gen = _tpu_generation()
    tm_def, _, _, vmem_cap = _defaults_for_gen(gen)
    if tm is None:
        tm = tm_def

    M = B * S
    # Shrink the row tile for small M (decode); round to 16 for bf16 sublane
    # packing so stores stay unmasked.
    tm = max(16, min(tm, _round_up(M, 16)))

    # v7x has two TensorCores: make sure the "parallel" m axis has >= 2 steps
    # so both cores get work on decode / small-M shapes.
    if gen >= 7 and _round_up(M, tm) // tm == 1 and tm >= 32:
        tm = max(16, _round_up((M + 1) // 2, 16))

    x_item = jnp.dtype(x.dtype).itemsize
    w_item = jnp.dtype(w_dtype).itemsize
    o_item = jnp.dtype(out_dtype).itemsize

    def vmem_needed(tm_):
        return (2 * tm_ * H * x_item            # x tiles (double-buffered)
                + 2 * H * 2 * ti * w_item       # fused gate|up weight tiles
                + 2 * ti * H * w_item           # down_proj weight tiles
                + 2 * tm_ * H * o_item          # output tiles
                + tm_ * H * 4                   # f32 accumulator scratch
                + tm_ * H * w_item              # in-kernel bf16 cast of x
                + tm_ * ti * 16)                # f32 gate_up/hidden temporaries

    headroom = 4 * 1024 * 1024                  # compiler scratch headroom
    while vmem_needed(tm) + headroom > vmem_cap and tm > 16:
        tm = max(16, tm // 2)

    M_pad = _round_up(M, tm)
    x2d = x.reshape(M, H)
    if M_pad != M:
        # TODO(synk): replace the pad with a masked final store / clamped
        # element index_map to avoid one extra HBM pass over x for ragged M.
        x2d = jnp.pad(x2d, ((0, M_pad - M), (0, 0)))

    grid = (M_pad // tm, nI)                    # reduction (I) axis last

    vmem_limit = int(min(vmem_cap,
                         max(vmem_needed(tm) + headroom, 32 * 1024 * 1024)))

    cost = pl.CostEstimate(
        flops=6 * M_pad * H * I,                # 2*M*H*2I + 2*M*I*H
        transcendentals=M_pad * I,              # sigmoid
        bytes_accessed=(M_pad * H * x_item
                        + M_pad * H * o_item
                        + grid[0] * 3 * H * I * w_item),
    )

    # TODO(synk): on v7x, add pipeline_mode=pl.Buffered(3) to the weight
    # BlockSpecs when the VMEM budget still allows an extra weight buffer.
    out = pl.pallas_call(
        _llama_mlp_kernel,
        out_shape=jax.ShapeDtypeStruct((M_pad, H), out_dtype),
        grid_spec=pltpu.PrefetchScalarGridSpec(
            num_scalar_prefetch=0,
            grid=grid,
            in_specs=[
                pl.BlockSpec((tm, H), lambda m, k: (m, 0)),
                pl.BlockSpec((1, H, 2 * ti), lambda m, k: (k, 0, 0)),
                pl.BlockSpec((1, ti, H), lambda m, k: (k, 0, 0)),
            ],
            out_specs=pl.BlockSpec((tm, H), lambda m, k: (m, 0)),
            scratch_shapes=[pltpu.VMEM((tm, H), jnp.float32)],
        ),
        compiler_params=pltpu.CompilerParams(
            dimension_semantics=("parallel", "arbitrary"),
            vmem_limit_bytes=vmem_limit,
        ),
        cost_estimate=cost,
    )(x2d, wgu, wd)

    if M_pad != M:
        out = out[:M]
    return out.reshape(B, S, H)


def llama_mlp(x, w_gate, w_up, w_down, *, tm=None, ti=None):
    """Convenience wrapper. For real models, hoist prepare_llama_mlp_weights
    to weight-load time and call llama_mlp_apply directly."""
    wgu, wd = prepare_llama_mlp_weights(w_gate, w_up, w_down, ti=ti)
    return llama_mlp_apply(x, wgu, wd, tm=tm)


if __name__ == "__main__":
    # Small config: hidden_size=256, intermediate_size=512, hidden_act="silu",
    # pretraining_tp=1.  Input: batch=2, seq=64.
    B, S, H, I = 2, 64, 256, 512

    key = jax.random.PRNGKey(0)
    kx, kg, ku, kd = jax.random.split(key, 4)
    x = jax.random.normal(kx, (B, S, H), dtype=jnp.float32)
    # Deterministic synthetic weights in PyTorch nn.Linear layout (out, in).
    w_gate = jax.random.normal(kg, (I, H), dtype=jnp.float32) * 0.02
    w_up = jax.random.normal(ku, (I, H), dtype=jnp.float32) * 0.02
    w_down = jax.random.normal(kd, (H, I), dtype=jnp.float32) * 0.02

    # Weight prep hoisted out of the forward path (one-time, at load).
    wgu, wd = prepare_llama_mlp_weights(w_gate, w_up, w_down)
    y = jax.block_until_ready(llama_mlp_apply(x, wgu, wd))

    # Reference 1: emulate the kernel's bf16-input / f32-accumulate matmuls.
    f32 = jnp.float32
    xb = x.astype(jnp.bfloat16).astype(f32)
    wgb = w_gate.astype(jnp.bfloat16).astype(f32)
    wub = w_up.astype(jnp.bfloat16).astype(f32)
    wdb = w_down.astype(jnp.bfloat16).astype(f32)
    g = xb @ wgb.T
    u = xb @ wub.T
    h = (g * jax.nn.sigmoid(g) * u).astype(jnp.bfloat16).astype(f32)
    ref_bf16 = h @ wdb.T
    assert jnp.allclose(y, ref_bf16, atol=2e-4, rtol=1e-2), (
        "mismatch vs bf16-emulated reference, max abs diff = "
        f"{float(jnp.max(jnp.abs(y - ref_bf16)))}")

    # Reference 2 (sanity): full f32 math; loose tolerance covers the bf16 cast.
    g32 = x @ w_gate.T
    u32 = x @ w_up.T
    ref_f32 = (g32 * jax.nn.sigmoid(g32) * u32) @ w_down.T
    assert jnp.allclose(y, ref_f32, atol=1e-2, rtol=1e-1), "mismatch vs f32 reference"

    print("KERNEL_OK")
</pallas_src>

<mosaic_0001>
module attributes {stable_mosaic.version = 11 : i64} {
  func.func @_llama_mlp_kernel(%arg0: i32, %arg1: i32, %arg2: memref<128x256xf32, #tpu.memory_space<vmem>>, %arg3: memref<1x256x1024xbf16, #tpu.memory_space<vmem>>, %arg4: memref<1x512x256xbf16, #tpu.memory_space<vmem>>, %arg5: memref<128x256xf32, #tpu.memory_space<vmem>>, %arg6: memref<128x256xf32, #tpu.memory_space<vmem>>) attributes {dimension_semantics = [#tpu.dimension_semantics<parallel>, #tpu.dimension_semantics<arbitrary>], iteration_bounds = array<i64: 1, 1>, scalar_prefetch = 0 : i64, scratch_operands = 1 : i64, tpu.core_type = #tpu.core_type<tc>, window_params = [{transform_indices = @transform_0, window_bounds = array<i64: 128, 256>}, {transform_indices = @transform_1, window_bounds = array<i64: 1, 256, 1024>}, {transform_indices = @transform_2, window_bounds = array<i64: 1, 512, 256>}, {transform_indices = @transform_3, window_bounds = array<i64: 128, 256>}]} {
    %c0_i32 = arith.constant 0 : i32
    %0 = arith.cmpi eq, %arg1, %c0_i32 : i32
    %1 = arith.extui %0 : i1 to i32
    %c0_i32_0 = arith.constant 0 : i32
    %2 = arith.cmpi ne, %1, %c0_i32_0 : i32
    scf.if %2 {
      %cst_16 = arith.constant 0.000000e+00 : f32
      %27 = vector.broadcast %cst_16 : f32 to vector<128x256xf32>
      %c0_17 = arith.constant 0 : index
      %c0_18 = arith.constant 0 : index
      %28 = vector.load %arg6[%c0_17, %c0_18] : memref<128x256xf32, #tpu.memory_space<vmem>>, vector<128x256xf32>
      tpu.vector_store %arg6[%c0_17, %c0_18], %27 {strides = array<i32>} : memref<128x256xf32, #tpu.memory_space<vmem>>, vector<128x256xf32>,
    } else {
    }
    %c0 = arith.constant 0 : index
    %c0_1 = arith.constant 0 : index
    %3 = vector.load %arg2[%c0, %c0_1] : memref<128x256xf32, #tpu.memory_space<vmem>>, vector<128x256xf32>
    %4 = arith.truncf %3 : vector<128x256xf32> to vector<128x256xbf16>
    %c0_2 = arith.constant 0 : index
    %c0_3 = arith.constant 0 : index
    %c0_4 = arith.constant 0 : index
    %5 = vector.load %arg3[%c0_2, %c0_3, %c0_4] : memref<1x256x1024xbf16, #tpu.memory_space<vmem>>, vector<1x256x1024xbf16>
    %6 = vector.shape_cast %5 : vector<1x256x1024xbf16> to vector<256x1024xbf16>
    %cst = arith.constant dense<0.000000e+00> : vector<128x1024xf32>
    %7 = tpu.matmul %4, %6, %cst {dimension_numbers = #tpu.dot_dimension_numbers<[1], [0], [0], [1], [0, 0, 1, 1], [], []>} : vector<128x256xbf16>, vector<256x1024xbf16>, vector<128x1024xf32> -> vector<128x1024xf32>
    %8 = vector.extract_strided_slice %7 {offsets = [0, 0], sizes = [128, 512], strides = [1, 1]} : vector<128x1024xf32> to vector<128x512xf32>
    %9 = vector.extract_strided_slice %7 {offsets = [0, 512], sizes = [128, 512], strides = [1, 1]} : vector<128x1024xf32> to vector<128x512xf32>
    %10 = arith.negf %8 : vector<128x512xf32>
    %11 = math.exp %10 : vector<128x512xf32>
    %cst_5 = arith.constant 1.000000e+00 : f32
    %12 = vector.broadcast %cst_5 : f32 to vector<128x512xf32>
    %13 = arith.addf %12, %11 : vector<128x512xf32>
    %14 = arith.divf %12, %13 : vector<128x512xf32>
    %15 = arith.mulf %8, %14 : vector<128x512xf32>
    %16 = arith.mulf %15, %9 : vector<128x512xf32>
    %c0_6 = arith.constant 0 : index
    %c0_7 = arith.constant 0 : index
    %17 = vector.load %arg6[%c0_6, %c0_7] : memref<128x256xf32, #tpu.memory_space<vmem>>, vector<128x256xf32>
    %18 = arith.truncf %16 : vector<128x512xf32> to vector<128x512xbf16>
    %c0_8 = arith.constant 0 : index
    %c0_9 = arith.constant 0 : index
    %c0_10 = arith.constant 0 : index
    %19 = vector.load %arg4[%c0_8, %c0_9, %c0_10] : memref<1x512x256xbf16, #tpu.memory_space<vmem>>, vector<1x512x256xbf16>
    %20 = vector.shape_cast %19 : vector<1x512x256xbf16> to vector<512x256xbf16>
    %cst_11 = arith.constant dense<0.000000e+00> : vector<128x256xf32>
    %21 = tpu.matmul %18, %20, %cst_11 {dimension_numbers = #tpu.dot_dimension_numbers<[1], [0], [0], [1], [0, 0, 1, 1], [], []>} : vector<128x512xbf16>, vector<512x256xbf16>, vector<128x256xf32> -> vector<128x256xf32>
    %22 = arith.addf %17, %21 : vector<128x256xf32>
    %c0_12 = arith.constant 0 : index
    %c0_13 = arith.constant 0 : index
    %23 = vector.load %arg6[%c0_12, %c0_13] : memref<128x256xf32, #tpu.memory_space<vmem>>, vector<128x256xf32>
    tpu.vector_store %arg6[%c0_12, %c0_13], %22 {strides = array<i32>} : memref<128x256xf32, #tpu.memory_space<vmem>>, vector<128x256xf32>,
    %c0_i32_14 = arith.constant 0 : i32
    %24 = arith.cmpi eq, %arg1, %c0_i32_14 : i32
    %25 = arith.extui %24 : i1 to i32
    %c0_i32_15 = arith.constant 0 : i32
    %26 = arith.cmpi ne, %25, %c0_i32_15 : i32
    scf.if %26 {
      %c0_16 = arith.constant 0 : index
      %c0_17 = arith.constant 0 : index
      %27 = vector.load %arg6[%c0_16, %c0_17] : memref<128x256xf32, #tpu.memory_space<vmem>>, vector<128x256xf32>
      %c0_18 = arith.constant 0 : index
      %c0_19 = arith.constant 0 : index
      %28 = vector.load %arg5[%c0_18, %c0_19] : memref<128x256xf32, #tpu.memory_space<vmem>>, vector<128x256xf32>
      tpu.vector_store %arg5[%c0_18, %c0_19], %27 {strides = array<i32>} : memref<128x256xf32, #tpu.memory_space<vmem>>, vector<128x256xf32>,
    } else {
    }
    return
  }
  func.func @transform_0(%arg0: i32, %arg1: i32) -> (i32, i32) {
    %c0_i32 = arith.constant 0 : i32
    %c0_i32_0 = arith.constant 0 : i32
    return %arg0, %c0_i32 : i32, i32
  }
  func.func @transform_1(%arg0: i32, %arg1: i32) -> (i32, i32, i32) {
    %c0_i32 = arith.constant 0 : i32
    %c0_i32_0 = arith.constant 0 : i32
    %c0_i32_1 = arith.constant 0 : i32
    return %arg1, %c0_i32, %c0_i32_0 : i32, i32, i32
  }
  func.func @transform_2(%arg0: i32, %arg1: i32) -> (i32, i32, i32) {
    %c0_i32 = arith.constant 0 : i32
    %c0_i32_0 = arith.constant 0 : i32
    %c0_i32_1 = arith.constant 0 : i32
    return %arg1, %c0_i32, %c0_i32_0 : i32, i32, i32
  }
  func.func @transform_3(%arg0: i32, %arg1: i32) -> (i32, i32) {
    %c0_i32 = arith.constant 0 : i32
    %c0_i32_0 = arith.constant 0 : i32
    return %arg0, %c0_i32 : i32, i32
  }
}

</mosaic_0001>

<bundles_post_ra>
// kernel: tpu_custom_call.1
= control target key start
LH: loop header
LB: loop body
LE: loop exit
PB: predicated region body
PF: predicated region fallthrough
CT: control target
= control target key end

     0   :  { %8 = vsyncpa [#allocation4], 0  ;;  %s3971_s0 = inlined_call_operand.hbm [shape: f32[128,256], index: 0, kind: input, shape index: {}]   ;;  %s3972_s1 = inlined_call_operand.hbm [shape: bf16[1,256,1024], index: 1, kind: input, shape index: {}]   ;;  %s3973_s2 = inlined_call_operand.hbm [shape: bf16[1,512,256], index: 2, kind: input, shape index: {}]   ;;  %s3974_s3 = inlined_call_operand.hbm [shape: f32[128,256], index: 3, kind: output, shape index: {}]  }
   0x1   :  { %9 = vsyncpa [#allocation7], 0 }
   0x2   :  { %10 = vsyncpa [#allocation5], 0  ;;  %s3439_s12 = smov [#allocation6]   ;;  %s3345_s16 = scalar_lea.hbm %s3972_s1, 16384 }
   0x3   :  { %s28_s13 = sshll.u32 %s3439_s12, 4  ;;  %p3346_p0 = scmp.ne.s32.totalorder %s3972_s1, %s3345_s16  ;;  %s29_s13 = int_to_ptr.vmem [resolvable:$true] %s28_s13 }
   0x4   :  { %p3349_p1 = scmp.lt.u32.totalorder %s3345_s16, %s3972_s1 }
   0x6   :  { %p3351_p2 = pnand %p3349_p1, %p3346_p0 }
   0x8   :  { %3354 = shalt.err (!%p3351_p2)
}
   0x9   :  { %s3355_s21 = scalar_lea.vmem %s29_s13, 16384  ;;  %p3360_p4 = scmp.lt.s32.totalorder %s29_s13, %s29_s13 }
   0xa   :  { %p3356_p3 = scmp.ne.s32.totalorder %s29_s13, %s3355_s21  ;;  %p3361_p5 = scmp.lt.s32.totalorder %s3355_s21, %s3355_s21 }
   0xc   :  { %p3362_p6 = por %p3361_p5, %p3360_p4 }
   0xe   :  { %p3363_p7 = pnand %p3362_p6, %p3356_p3 }
  0x10   :  { %3366 = shalt.err (!%p3363_p7)
}
  0x11   :  { %s3440_s22 = smov 512   ;;  %s3441_s23 = smov 32  }
  0x12   :  { %34 = dma.hbm_to_vmem [thread:$0]  %s3972_s1, 16384, %s29_s13, [#allocation7], %s3440_s22, %s3440_s22, %s3441_s23  }
  0x13   :  { %s3442_s26 = smov [#allocation3]   ;;  %s3367_s30 = scalar_lea.hbm %s3971_s0, 4096 }
  0x14   :  { %s16_s27 = sshll.u32 %s3442_s26, 4  ;;  %p3368_p8 = scmp.ne.s32.totalorder %s3971_s0, %s3367_s30  ;;  %s17_s27 = int_to_ptr.vmem [resolvable:$true] %s16_s27 }
  0x15   :  { %p3371_p9 = scmp.lt.u32.totalorder %s3367_s30, %s3971_s0 }
  0x17   :  { %p3373_p10 = pnand %p3371_p9, %p3368_p8 }
  0x19   :  { %3376 = shalt.err (!%p3373_p10)
}
  0x1a   :  { %s3377_s8 = scalar_lea.vmem %s17_s27, 4096  ;;  %p3382_p12 = scmp.lt.s32.totalorder %s17_s27, %s17_s27 }
  0x1b   :  { %p3378_p11 = scmp.ne.s32.totalorder %s17_s27, %s3377_s8  ;;  %p3383_p13 = scmp.lt.s32.totalorder %s3377_s8, %s3377_s8 }
  0x1d   :  { %p3384_p0 = por %p3383_p13, %p3382_p12 }
  0x1f   :  { %p3385_p1 = pnand %p3384_p0, %p3378_p11 }
  0x21   :  { %3388 = shalt.err (!%p3385_p1)
}
  0x22   :  { %s3443_s1 = smov 256   ;;  %s3444_s9 = smov 16  }
  0x23   :  { %22 = dma.hbm_to_vmem [thread:$0]  %s3971_s0, 4096, %s17_s27, [#allocation4], %s3443_s1, %s3443_s1, %s3444_s9  }
  0x24   :  { %s3445_s12 = smov [#allocation8]   ;;  %s3389_s16 = scalar_lea.hbm %s3973_s2, 8192 }
  0x25   :  { %s40_s13 = sshll.u32 %s3445_s12, 4  ;;  %p3390_p2 = scmp.ne.s32.totalorder %s3973_s2, %s3389_s16  ;;  %s41_s13 = int_to_ptr.vmem [resolvable:$true] %s40_s13 }
  0x26   :  { %p3393_p3 = scmp.lt.u32.totalorder %s3389_s16, %s3973_s2 }
  0x28   :  { %p3395_p4 = pnand %p3393_p3, %p3390_p2 }
  0x2a   :  { %3398 = shalt.err (!%p3395_p4)
}
  0x2b   :  { %s3399_s21 = scalar_lea.vmem %s41_s13, 8192  ;;  %p3404_p6 = scmp.lt.s32.totalorder %s41_s13, %s41_s13 }
  0x2c   :  { %p3400_p5 = scmp.ne.s32.totalorder %s41_s13, %s3399_s21  ;;  %p3405_p7 = scmp.lt.s32.totalorder %s3399_s21, %s3399_s21 }
  0x2e   :  { %p3406_p8 = por %p3405_p7, %p3404_p6 }
  0x30   :  { %p3407_p9 = pnand %p3406_p8, %p3400_p5 }
  0x32   :  { %3410 = shalt.err (!%p3407_p9)
}
  0x33   :  { %s3446_s0 = smov 128   ;;  %s3447_s22 = smov 8  }
  0x34   :  { %46 = dma.hbm_to_vmem [thread:$0]  %s3973_s2, 8192, %s41_s13, [#allocation7], %s3446_s0, %s3446_s0, %s3447_s22  }
  0x35   :  { %3433 = dma.done.wait [#allocation4], 4096  }
  0x36   :  { %3434 = vsyncadd [#allocation4], 4294963200 }
  0x37   :  { %3435 = dma.done.wait [#allocation7], 24576  }
  0x38   :  { %3436 = vsyncadd [#allocation7], 4294942720  ;;  %v140_v0 = vld [vmem:[#allocation6] sm:$0xff]  ;;  %v142_v11 = vld [vmem:[#allocation6 + $0x10] sm:$0xff]  ;;  %s3448_s2 = smov [#allocation9]  }
  0x39   :  { %v144_v1 = vld [vmem:[#allocation6 + $0x20] sm:$0xff]  ;;  %v146_v12 = vld [vmem:[#allocation6 + $0x30] sm:$0xff]  ;;  %v93_v39 = vld [vmem:[#allocation3 + $0x8] sm:$0xff]  ;;  %s2682_s25 = sshll.u32 %s3448_s2, 4  ;;  %s2683_s25 = int_to_ptr.vmem [resolvable:$true] %s2682_s25 }
  0x3a   :  { %v148_v2 = vld [vmem:[#allocation6 + $0x40] sm:$0xff]  ;;  %v2696_v3 = vcombine.high %v140_v0, %v144_v1  ;;  %v2695_v4 = vcombine.low %v140_v0, %v144_v1  ;;  %v2700_v15 = vcombine.high %v142_v11, %v146_v12  ;;  %v2699_v16 = vcombine.low %v142_v11, %v146_v12  ;;  %v150_v17 = vld [vmem:[#allocation6 + $0x50] sm:$0xff]  ;;  %v95_v42 = vld [vmem:[#allocation3 + $0x18] sm:$0xff]  ;;  %s3411_s26 = scalar_lea.vmem %s2683_s25, 4096  ;;  %p3416_p11 = scmp.lt.s32.totalorder %s2683_s25, %s2683_s25 }
  0x3b   :  { %v152_v5 = vld [vmem:[#allocation6 + $0x60] sm:$0xff]  ;;  %v154_v18 = vld [vmem:[#allocation6 + $0x70] sm:$0xff]  ;;  %v3508_v46 = vpack.c.bf16 %v95_v42, %v93_v39  ;;  %p3412_p10 = scmp.ne.s32.totalorder %s2683_s25, %s3411_s26  ;;  %p3417_p12 = scmp.lt.s32.totalorder %s3411_s26, %s3411_s26 }
  0x3c   :  { %v2704_v6 = vcombine.high %v148_v2, %v152_v5  ;;  %v156_v7 = vld [vmem:[#allocation6 + $0x80] sm:$0xff]  ;;  %908 = vmatprep.subr.bf16.mxu1 %v2696_v3  ;;  %v2703_v9 = vcombine.low %v148_v2, %v152_v5  ;;  %1134 = vmatprep.subr.bf16.mxu0 %v2700_v15  ;;  %v2708_v20 = vcombine.high %v150_v17, %v154_v18  ;;  %v158_v21 = vld [vmem:[#allocation6 + $0x90] sm:$0xff] }
  0x3d   :  { %v160_v8 = vld [vmem:[#allocation6 + $0xa0] sm:$0xff]  ;;  %909 = vmatpush1.bf16.msra.mxu1 %v2695_v4  ;;  %v162_v22 = vld [vmem:[#allocation6 + $0xb0] sm:$0xff]  ;;  %1135 = vmatpush1.bf16.msra.mxu0 %v2699_v16  ;;  %v2707_v24 = vcombine.low %v150_v17, %v154_v18  ;;  %p3418_p13 = por %p3417_p12, %p3416_p11 }
  0x3e   :  { %910 = vmatprep.subr.bf16.mxu1 %v2704_v6  ;;  %v2712_v10 = vcombine.high %v156_v7, %v160_v8  ;;  %v164_v13 = vld [vmem:[#allocation6 + $0xc0] sm:$0xff]  ;;  %v2711_v19 = vcombine.low %v156_v7, %v160_v8  ;;  %1136 = vmatprep.subr.bf16.mxu0 %v2708_v20  ;;  %v2716_v27 = vcombine.high %v158_v21, %v162_v22  ;;  %v166_v28 = vld [vmem:[#allocation6 + $0xd0] sm:$0xff] }
  0x3f   :  { %v168_v14 = vld [vmem:[#allocation6 + $0xe0] sm:$0xff]  ;;  %v170_v29 = vld [vmem:[#allocation6 + $0xf0] sm:$0xff]  ;;  %v2715_v32 = vcombine.low %v158_v21, %v162_v22  ;;  %940 = vmatprep.mubr.bf16.mxu1 %v3508_v46  ;;  %1166 = vmatprep.mubr.bf16.mxu0 %v3508_v46  ;;  %p3419_p0 = pnand %p3418_p13, %p3412_p10 }
  0x40   :  { %v2720_v23 = vcombine.high %v164_v13, %v168_v14  ;;  %v172_v25 = vld [vmem:[#allocation6 + $0x100] sm:$0xff]  ;;  %v2719_v30 = vcombine.low %v164_v13, %v168_v14  ;;  %v2724_v35 = vcombine.high %v166_v28, %v170_v29  ;;  %v174_v36 = vld [vmem:[#allocation6 + $0x110] sm:$0xff]  ;;  %v2723_v41 = vcombine.low %v166_v28, %v170_v29 }
  0x41   :  { %911 = vmatpush1.bf16.msra.mxu1 %v2703_v9  ;;  %v176_v26 = vld [vmem:[#allocation6 + $0x120] sm:$0xff]  ;;  %1137 = vmatpush1.bf16.msra.mxu0 %v2707_v24  ;;  %v178_v37 = vld [vmem:[#allocation6 + $0x130] sm:$0xff] }
  0x42   :  { %912 = vmatprep.subr.bf16.mxu1 %v2712_v10  ;;  %v2728_v31 = vcombine.high %v172_v25, %v176_v26  ;;  %v180_v33 = vld [vmem:[#allocation6 + $0x140] sm:$0xff]  ;;  %1138 = vmatprep.subr.bf16.mxu0 %v2716_v27  ;;  %v2727_v38 = vcombine.low %v172_v25, %v176_v26  ;;  %v2732_v45 = vcombine.high %v174_v36, %v178_v37  ;;  %v182_v47 = vld [vmem:[#allocation6 + $0x150] sm:$0xff] }
  0x43   :  { %v184_v34 = vld [vmem:[#allocation6 + $0x160] sm:$0xff]  ;;  %v186_v48 = vld [vmem:[#allocation6 + $0x170] sm:$0xff]  ;;  %v2731_v51 = vcombine.low %v174_v36, %v178_v37 }
  0x44   :  { %v2736_v40 = vcombine.high %v180_v33, %v184_v34  ;;  %v188_v43 = vld [vmem:[#allocation6 + $0x180] sm:$0xff]  ;;  %v2735_v49 = vcombine.low %v180_v33, %v184_v34  ;;  %v2740_v54 = vcombine.high %v182_v47, %v186_v48  ;;  %v190_v55 = vld [vmem:[#allocation6 + $0x190] sm:$0xff]  ;;  %v2739_v59 = vcombine.low %v182_v47, %v186_v48 }
  0x45   :  { %913 = vmatpush1.bf16.msra.mxu1 %v2711_v19  ;;  %1139 = vmatpush1.bf16.msra.mxu0 %v2715_v32  ;;  %v192_v44 = vld [vmem:[#allocation6 + $0x1a0] sm:$0xff]  ;;  %v194_v56 = vld [vmem:[#allocation6 + $0x1b0] sm:$0xff] }
  0x46   :  { %914 = vmatprep.subr.bf16.mxu1 %v2720_v23  ;;  %1140 = vmatprep.subr.bf16.mxu0 %v2724_v35  ;;  %v2744_v50 = vcombine.high %v188_v43, %v192_v44  ;;  %v196_v52 = vld [vmem:[#allocation6 + $0x1c0] sm:$0xff]  ;;  %v2743_v57 = vcombine.low %v188_v43, %v192_v44  ;;  %v2748_v62 = vcombine.high %v190_v55, %v194_v56  ;;  %v198_v63 = vld [vmem:[#allocation6 + $0x1d0] sm:$0xff] }
  0x47   :  { %v200_v53 = vld [vmem:[#allocation6 + $0x1e0] sm:$0xff]  ;;  %v202_v0 = vld [vmem:[#allocation6 + $0x1f0] sm:$0xff]  ;;  %v2747_v3 = vcombine.low %v190_v55, %v194_v56 }
  0x48   :  { %v2752_v58 = vcombine.high %v196_v52, %v200_v53  ;;  %v204_v60 = vld [vmem:[#allocation6 + $0x200] sm:$0xff]  ;;  %v2751_v1 = vcombine.low %v196_v52, %v200_v53  ;;  %v2756_v6 = vcombine.high %v198_v63, %v202_v0  ;;  %v206_v7 = vld [vmem:[#allocation6 + $0x210] sm:$0xff]  ;;  %v2755_v11 = vcombine.low %v198_v63, %v202_v0 }
  0x49   :  { %915 = vmatpush1.bf16.msra.mxu1 %v2719_v30  ;;  %1141 = vmatpush1.bf16.msra.mxu0 %v2723_v41  ;;  %v208_v61 = vld [vmem:[#allocation6 + $0x220] sm:$0xff]  ;;  %v210_v8 = vld [vmem:[#allocation6 + $0x230] sm:$0xff] }
  0x4a   :  { %916 = vmatprep.subr.bf16.mxu1 %v2728_v31  ;;  %1142 = vmatprep.subr.bf16.mxu0 %v2732_v45  ;;  %v2760_v2 = vcombine.high %v204_v60, %v208_v61  ;;  %v212_v4 = vld [vmem:[#allocation6 + $0x240] sm:$0xff]  ;;  %v2759_v9 = vcombine.low %v204_v60, %v208_v61  ;;  %v2764_v14 = vcombine.high %v206_v7, %v210_v8  ;;  %v214_v15 = vld [vmem:[#allocation6 + $0x250] sm:$0xff]  ;;  %v145_v60 = vld [vmem:[#allocation6 + $0x28] sm:$0xff] }
  0x4b   :  { %v216_v5 = vld [vmem:[#allocation6 + $0x260] sm:$0xff]  ;;  %v218_v16 = vld [vmem:[#allocation6 + $0x270] sm:$0xff]  ;;  %v2763_v19 = vcombine.low %v206_v7, %v210_v8  ;;  %v97_v7 = vld [vmem:[#allocation3 + $0x28] sm:$0xff] }
  0x4c   :  { %v2768_v10 = vcombine.high %v212_v4, %v216_v5  ;;  %v220_v12 = vld [vmem:[#allocation6 + $0x280] sm:$0xff]  ;;  %v2767_v17 = vcombine.low %v212_v4, %v216_v5  ;;  %v2772_v22 = vcombine.high %v214_v15, %v218_v16  ;;  %v222_v23 = vld [vmem:[#allocation6 + $0x290] sm:$0xff]  ;;  %v2771_v27 = vcombine.low %v214_v15, %v218_v16  ;;  %v149_v5 = vld [vmem:[#allocation6 + $0x48] sm:$0xff] }
  0x4d   :  { %917 = vmatpush1.bf16.msra.mxu1 %v2727_v38  ;;  %1143 = vmatpush1.bf16.msra.mxu0 %v2731_v51  ;;  %v224_v13 = vld [vmem:[#allocation6 + $0x2a0] sm:$0xff]  ;;  %v226_v24 = vld [vmem:[#allocation6 + $0x2b0] sm:$0xff]  ;;  %v99_v8 = vld [vmem:[#allocation3 + $0x38] sm:$0xff] }
  0x4e   :  { %918 = vmatprep.subr.bf16.mxu1 %v2736_v40  ;;  %1144 = vmatprep.subr.bf16.mxu0 %v2740_v54  ;;  %v2776_v18 = vcombine.high %v220_v12, %v224_v13  ;;  %v228_v20 = vld [vmem:[#allocation6 + $0x2c0] sm:$0xff]  ;;  %v2775_v25 = vcombine.low %v220_v12, %v224_v13  ;;  %v2780_v30 = vcombine.high %v222_v23, %v226_v24  ;;  %v230_v31 = vld [vmem:[#allocation6 + $0x2d0] sm:$0xff]  ;;  %v157_v15 = vld [vmem:[#allocation6 + $0x88] sm:$0xff] }
  0x4f   :  { %v232_v21 = vld [vmem:[#allocation6 + $0x2e0] sm:$0xff]  ;;  %v234_v32 = vld [vmem:[#allocation6 + $0x2f0] sm:$0xff]  ;;  %v2779_v35 = vcombine.low %v222_v23, %v226_v24  ;;  %v161_v16 = vld [vmem:[#allocation6 + $0xa8] sm:$0xff] }
  0x50   :  { %v2784_v26 = vcombine.high %v228_v20, %v232_v21  ;;  %v236_v28 = vld [vmem:[#allocation6 + $0x300] sm:$0xff]  ;;  %v2783_v33 = vcombine.low %v228_v20, %v232_v21  ;;  %v2788_v38 = vcombine.high %v230_v31, %v234_v32  ;;  %v238_v39 = vld [vmem:[#allocation6 + $0x310] sm:$0xff]  ;;  %v2787_v43 = vcombine.low %v230_v31, %v234_v32  ;;  %v101_v21 = vld [vmem:[#allocation3 + $0x48] sm:$0xff] }
  0x51   :  { %919 = vmatpush1.bf16.msra.mxu1 %v2735_v49  ;;  %1145 = vmatpush1.bf16.msra.mxu0 %v2739_v59  ;;  %v240_v29 = vld [vmem:[#allocation6 + $0x320] sm:$0xff]  ;;  %v242_v40 = vld [vmem:[#allocation6 + $0x330] sm:$0xff]  ;;  %v141_v59 = vld [vmem:[#allocation6 + $0x8] sm:$0xff] }
  0x52   :  { %920 = vmatprep.subr.bf16.mxu1 %v2744_v50  ;;  %1146 = vmatprep.subr.bf16.mxu0 %v2748_v62  ;;  %v2792_v34 = vcombine.high %v236_v28, %v240_v29  ;;  %v244_v36 = vld [vmem:[#allocation6 + $0x340] sm:$0xff]  ;;  %v2791_v41 = vcombine.low %v236_v28, %v240_v29  ;;  %v2796_v47 = vcombine.high %v238_v39, %v242_v40  ;;  %v246_v48 = vld [vmem:[#allocation6 + $0x350] sm:$0xff]  ;;  %v165_v24 = vld [vmem:[#allocation6 + $0xc8] sm:$0xff] }
  0x53   :  { %v248_v37 = vld [vmem:[#allocation6 + $0x360] sm:$0xff]  ;;  %v250_v49 = vld [vmem:[#allocation6 + $0x370] sm:$0xff]  ;;  %v2795_v54 = vcombine.low %v238_v39, %v242_v40  ;;  %v2697_v13 = vcombine.low %v141_v59, %v145_v60  ;;  %v2713_v28 = vcombine.low %v157_v15, %v161_v16  ;;  %v177_v32 = vld [vmem:[#allocation6 + $0x128] sm:$0xff] }
  0x54   :  { %v2800_v42 = vcombine.high %v244_v36, %v248_v37  ;;  %v252_v44 = vld [vmem:[#allocation6 + $0x380] sm:$0xff]  ;;  %v2799_v50 = vcombine.low %v244_v36, %v248_v37  ;;  %v254_v55 = vld [vmem:[#allocation6 + $0x390] sm:$0xff]  ;;  %v2803_v62 = vcombine.low %v246_v48, %v250_v49  ;;  %v105_v37 = vld [vmem:[#allocation3 + $0x68] sm:$0xff] }
  0x55   :  { %921 = vmatpush1.bf16.msra.mxu1 %v2743_v57  ;;  %1147 = vmatpush1.bf16.msra.mxu0 %v2747_v3  ;;  %v256_v45 = vld [vmem:[#allocation6 + $0x3a0] sm:$0xff]  ;;  %v258_v56 = vld [vmem:[#allocation6 + $0x3b0] sm:$0xff]  ;;  %v2804_v57 = vcombine.high %v246_v48, %v250_v49  ;;  %v181_v39 = vld [vmem:[#allocation6 + $0x148] sm:$0xff] }
  0x56   :  { %922 = vmatprep.subr.bf16.mxu1 %v2752_v58  ;;  %1148 = vmatprep.subr.bf16.mxu0 %v2756_v6  ;;  %v260_v51 = vld [vmem:[#allocation6 + $0x3c0] sm:$0xff]  ;;  %v2808_v53 = vcombine.high %v252_v44, %v256_v45  ;;  %v2807_v58 = vcombine.low %v252_v44, %v256_v45  ;;  %v262_v63 = vld [vmem:[#allocation6 + $0x3d0] sm:$0xff]  ;;  %v2812_v3 = vcombine.high %v254_v55, %v258_v56  ;;  %v153_v6 = vld [vmem:[#allocation6 + $0x68] sm:$0xff] }
  0x57   :  { %v264_v52 = vld [vmem:[#allocation6 + $0x3e0] sm:$0xff]  ;;  %v266_v0 = vld [vmem:[#allocation6 + $0x3f0] sm:$0xff]  ;;  %v2705_v23 = vcombine.low %v149_v5, %v153_v6  ;;  %v185_v40 = vld [vmem:[#allocation6 + $0x168] sm:$0xff] }
  0x58   :  { %v2816_v61 = vcombine.high %v260_v51, %v264_v52  ;;  %v2815_v4 = vcombine.low %v260_v51, %v264_v52  ;;  %v98_v20 = vld [vmem:[#allocation3 + $0x30] sm:$0xff]  ;;  %v2738_v44 = vcombine.high %v181_v39, %v185_v40  ;;  %v189_v45 = vld [vmem:[#allocation6 + $0x188] sm:$0xff]  ;;  %v2737_v48 = vcombine.low %v181_v39, %v185_v40  ;;  %v104_v49 = vld [vmem:[#allocation3 + $0x60] sm:$0xff] }
  0x59   :  { %923 = vmatpush1.bf16.msra.mxu1 %v2751_v1  ;;  %1149 = vmatpush1.bf16.msra.mxu0 %v2755_v11  ;;  %v92_v1 = vld [vmem:[#allocation3] sm:$0xff]  ;;  %v2820_v11 = vcombine.high %v262_v63, %v266_v0  ;;  %v109_v52 = vld [vmem:[#allocation3 + $0x88] sm:$0xff] }
  0x5a   :  { %924 = vmatprep.subr.bf16.mxu1 %v2760_v2  ;;  %1150 = vmatprep.subr.bf16.mxu0 %v2764_v14  ;;  %v94_v2 = vld [vmem:[#allocation3 + $0x10] sm:$0xff]  ;;  %v3514_v14 = vpack.c.bf16 %v99_v8, %v97_v7 }
  0x5b   :  { %v3512_v12 = vpack.c.bf16 %v94_v2, %v92_v1  ;;  %v113_v2 = vld [vmem:[#allocation3 + $0xa8] sm:$0xff] }
  0x5d   :  { %925 = vmatpush1.bf16.msra.mxu1 %v2759_v9  ;;  %1151 = vmatpush1.bf16.msra.mxu0 %v2763_v19  ;;  %v2698_v9 = vcombine.high %v141_v59, %v145_v60  ;;  %v96_v19 = vld [vmem:[#allocation3 + $0x20] sm:$0xff]  ;;  %v205_v60 = vld [vmem:[#allocation6 + $0x208] sm:$0xff] }
  0x5e   :  { %926 = vmatprep.subr.bf16.mxu1 %v2768_v10  ;;  %1152 = vmatprep.subr.bf16.mxu0 %v2772_v22  ;;  %v2811_v10 = vcombine.low %v254_v55, %v258_v56  ;;  %v103_v22 = vld [vmem:[#allocation3 + $0x58] sm:$0xff]  ;;  %v201_v55 = vld [vmem:[#allocation6 + $0x1e8] sm:$0xff] }
  0x5f   :  { %v3520_v29 = vpack.c.bf16 %v103_v22, %v101_v21  ;;  %v233_v21 = vld [vmem:[#allocation6 + $0x2e8] sm:$0xff] }
  0x61   :  { %927 = vmatpush1.bf16.msra.mxu1 %v2767_v17  ;;  %1153 = vmatpush1.bf16.msra.mxu0 %v2771_v27  ;;  %v2706_v17 = vcombine.high %v149_v5, %v153_v6  ;;  %v3518_v27 = vpack.c.bf16 %v98_v20, %v96_v19  ;;  %v217_v5 = vld [vmem:[#allocation6 + $0x268] sm:$0xff]  ;;  %v119_v19 = vld [vmem:[#allocation3 + $0xd8] sm:$0xff] }
  0x62   :  { %928 = vmatprep.subr.bf16.mxu1 %v2776_v18  ;;  %1154 = vmatprep.subr.bf16.mxu0 %v2780_v30  ;;  %v2819_v18 = vcombine.low %v262_v63, %v266_v0  ;;  %v173_v30 = vld [vmem:[#allocation6 + $0x108] sm:$0xff]  ;;  %v108_v63 = vld [vmem:[#allocation3 + $0x80] sm:$0xff]  ;;  %v110_v0 = vld [vmem:[#allocation3 + $0x90] sm:$0xff] }
  0x63   :  { %v2730_v36 = vcombine.high %v173_v30, %v177_v32  ;;  %v3542_v6 = vpack.c.bf16 %v110_v0, %v108_v63  ;;  %v229_v20 = vld [vmem:[#allocation6 + $0x2c8] sm:$0xff] }
  0x65   :  { %929 = vmatpush1.bf16.msra.mxu1 %v2775_v25  ;;  %1155 = vmatpush1.bf16.msra.mxu0 %v2779_v35  ;;  %v169_v25 = vld [vmem:[#allocation6 + $0xe8] sm:$0xff]  ;;  %v102_v35 = vld [vmem:[#allocation3 + $0x50] sm:$0xff] }
  0x66   :  { %930 = vmatprep.subr.bf16.mxu1 %v2784_v26  ;;  %1156 = vmatprep.subr.bf16.mxu0 %v2788_v38  ;;  %v2714_v26 = vcombine.high %v157_v15, %v161_v16  ;;  %v2722_v31 = vcombine.high %v165_v24, %v169_v25  ;;  %v107_v38 = vld [vmem:[#allocation3 + $0x78] sm:$0xff]  ;;  %v112_v15 = vld [vmem:[#allocation3 + $0xa0] sm:$0xff]  ;;  %v114_v16 = vld [vmem:[#allocation3 + $0xb0] sm:$0xff] }
  0x67   :  { %v3550_v22 = vpack.c.bf16 %v114_v16, %v112_v15 }
  0x69   :  { %931 = vmatpush1.bf16.msra.mxu1 %v2783_v33  ;;  %1157 = vmatpush1.bf16.msra.mxu0 %v2787_v43  ;;  %v2721_v33 = vcombine.low %v165_v24, %v169_v25  ;;  %v3528_v43 = vpack.c.bf16 %v107_v38, %v105_v37  ;;  %v2786_v25 = vcombine.high %v229_v20, %v233_v21  ;;  %v249_v37 = vld [vmem:[#allocation6 + $0x368] sm:$0xff] }
  0x6a   :  { %932 = vmatprep.subr.bf16.mxu1 %v2792_v34  ;;  %1158 = vmatprep.subr.bf16.mxu0 %v2796_v47  ;;  %v100_v34 = vld [vmem:[#allocation3 + $0x40] sm:$0xff]  ;;  %v193_v47 = vld [vmem:[#allocation6 + $0x1a8] sm:$0xff] }
  0x6b   :  { %v2746_v51 = vcombine.high %v189_v45, %v193_v47 }
  0x6d   :  { %933 = vmatpush1.bf16.msra.mxu1 %v2791_v41  ;;  %1159 = vmatpush1.bf16.msra.mxu0 %v2795_v54  ;;  %v3526_v41 = vpack.c.bf16 %v102_v35, %v100_v34  ;;  %v197_v54 = vld [vmem:[#allocation6 + $0x1c8] sm:$0xff]  ;;  %v123_v35 = vld [vmem:[#allocation3 + $0xf8] sm:$0xff] }
  0x6e   :  { %934 = vmatprep.subr.bf16.mxu1 %v2800_v42  ;;  %1160 = vmatprep.subr.bf16.mxu0 %v2804_v57  ;;  %v2729_v42 = vcombine.low %v173_v30, %v177_v32  ;;  %v2745_v57 = vcombine.low %v189_v45, %v193_v47  ;;  %v2754_v59 = vcombine.high %v197_v54, %v201_v55  ;;  %v118_v32 = vld [vmem:[#allocation3 + $0xd0] sm:$0xff]  ;;  %v121_v34 = vld [vmem:[#allocation3 + $0xe8] sm:$0xff] }
  0x6f   :  { %v2785_v30 = vcombine.low %v229_v20, %v233_v21  ;;  %v3560_v40 = vpack.c.bf16 %v123_v35, %v121_v34  ;;  %v257_v45 = vld [vmem:[#allocation6 + $0x3a8] sm:$0xff]  ;;  %v183_v34 = vld [vmem:[#allocation6 + $0x158] sm:$0xff] }
  0x70   :  { %v3007_v20 = vld [vmem:[#allocation8 + $0x44] ss:$8 sps:$4 sm:$0xff]   ;;  %v187_v35 = vld [vmem:[#allocation6 + $0x178] sm:$0xff] }
  0x71   :  { %935 = vmatpush1.bf16.msra.mxu1 %v2799_v50  ;;  %1161 = vmatpush1.bf16.msra.mxu0 %v2803_v62  ;;  %v106_v50 = vld [vmem:[#allocation3 + $0x70] sm:$0xff]  ;;  %v2753_v62 = vcombine.low %v197_v54, %v201_v55 }
  0x72   :  { %936 = vmatprep.subr.bf16.mxu1 %v2808_v53  ;;  %1162 = vmatprep.subr.bf16.mxu0 %v2812_v3  ;;  %v111_v53 = vld [vmem:[#allocation3 + $0x98] sm:$0xff]  ;;  %v3534_v56 = vpack.c.bf16 %v106_v50, %v104_v49  ;;  %v122_v49 = vld [vmem:[#allocation3 + $0xf0] sm:$0xff] }
  0x73   :  { %v115_v3 = vld [vmem:[#allocation3 + $0xb8] sm:$0xff] }
  0x74   :  { %v3544_v8 = vpack.c.bf16 %v115_v3, %v113_v2  ;;  %v151_v2 = vld [vmem:[#allocation6 + $0x58] sm:$0xff] }
  0x75   :  { %937 = vmatpush1.bf16.msra.mxu1 %v2807_v58  ;;  %1163 = vmatpush1.bf16.msra.mxu0 %v2811_v10  ;;  %v3536_v58 = vpack.c.bf16 %v111_v53, %v109_v52  ;;  %v221_v10 = vld [vmem:[#allocation6 + $0x288] sm:$0xff]  ;;  %v155_v3 = vld [vmem:[#allocation6 + $0x78] sm:$0xff] }
  0x76   :  { %938 = vmatprep.subr.bf16.mxu1 %v2816_v61  ;;  %1164 = vmatprep.subr.bf16.mxu0 %v2820_v11  ;;  %v209_v61 = vld [vmem:[#allocation6 + $0x228] sm:$0xff]  ;;  %v2709_v15 = vcombine.low %v151_v2, %v155_v3 }
  0x77   :  { %v2762_v1 = vcombine.high %v205_v60, %v209_v61  ;;  %v2761_v7 = vcombine.low %v205_v60, %v209_v61  ;;  %v225_v11 = vld [vmem:[#allocation6 + $0x2a8] sm:$0xff]  ;;  %v147_v60 = vld [vmem:[#allocation6 + $0x38] sm:$0xff] }
  0x78   :  { %v265_v52 = vld [vmem:[#allocation6 + $0x3e8] sm:$0xff] }
  0x79   :  { %939 = vmatpush1.bf16.msra.mxu1 %v2815_v4  ;;  %1165 = vmatpush1.bf16.msra.mxu0 %v2819_v18  ;;  %v213_v4 = vld [vmem:[#allocation6 + $0x248] sm:$0xff] }
  0x7a   :  { %1021 = vmatprep.subr.bf16.mxu1 %v2698_v9  ;;  %v2770_v9 = vcombine.high %v213_v4, %v217_v5  ;;  %v117_v18 = vld [vmem:[#allocation3 + $0xc8] sm:$0xff] }
  0x7b   :  { %v3552_v24 = vpack.c.bf16 %v119_v19, %v117_v18  ;;  %v2993_v61 = vld [vmem:[#allocation8] ss:$8 sps:$4 sm:$0xff]   ;;  %v167_v18 = vld [vmem:[#allocation6 + $0xd8] sm:$0xff] }
  0x7c   :  { %941 = vmatmul.mubr.bf16.vlgmr.msra.gmra.mrb[0].mxu1 %v3512_v12  ;;  %1167 = vmatmul.mubr.bf16.vlgmr.msra.gmra.mrb[0].mxu0 %v3512_v12  ;;  %v171_v19 = vld [vmem:[#allocation6 + $0xf8] sm:$0xff] }
  0x7d   :  { %1022 = vmatpush1.bf16.msra.mxu1 %v2697_v13  ;;  %950 = vmatprep.mubr.bf16.mxu1 %v3514_v14  ;;  %v2769_v13 = vcombine.low %v213_v4, %v217_v5  ;;  %v3001_v4 = vld [vmem:[#allocation8 + $0x24] ss:$8 sps:$4 sm:$0xff]  }
  0x7e   :  { %1023 = vmatprep.subr.bf16.mxu1 %v2706_v17  ;;  %1176 = vmatprep.mubr.bf16.mxu0 %v3514_v14  ;;  %v2778_v17 = vcombine.high %v221_v10, %v225_v11 }
  0x81   :  { %1024 = vmatpush1.bf16.msra.mxu1 %v2705_v23  ;;  %v2777_v23 = vcombine.low %v221_v10, %v225_v11  ;;  %v159_v10 = vld [vmem:[#allocation6 + $0x98] sm:$0xff] }
  0x82   :  { %1025 = vmatprep.subr.bf16.mxu1 %v2714_v26  ;;  %v237_v26 = vld [vmem:[#allocation6 + $0x308] sm:$0xff]  ;;  %v163_v11 = vld [vmem:[#allocation6 + $0xb8] sm:$0xff] }
  0x83   :  { %v2718_v16 = vcombine.high %v159_v10, %v163_v11  ;;  %v2717_v21 = vcombine.low %v159_v10, %v163_v11  ;;  %v227_v10 = vld [vmem:[#allocation6 + $0x2b8] sm:$0xff]  ;;  %v3023_v11 = vld [vmem:[#allocation8 + $0xa0] ss:$8 sps:$4 sm:$0xff]  }
  0x84   :  { %951 = vmatmul.mubr.bf16.gmra.mrb[4].mxu1 %v3518_v27  ;;  %1177 = vmatmul.mubr.bf16.gmra.mrb[4].mxu0 %v3518_v27 }
  0x85   :  { %1026 = vmatpush1.bf16.msra.mxu1 %v2713_v28  ;;  %960 = vmatprep.mubr.bf16.mxu1 %v3520_v29  ;;  %v241_v28 = vld [vmem:[#allocation6 + $0x328] sm:$0xff] }
  0x86   :  { %1027 = vmatprep.subr.bf16.mxu1 %v2722_v31  ;;  %1186 = vmatprep.mubr.bf16.mxu0 %v3520_v29  ;;  %v116_v31 = vld [vmem:[#allocation3 + $0xc0] sm:$0xff]  ;;  %v2793_v39 = vcombine.low %v237_v26, %v241_v28 }
  0x87   :  { %v3558_v38 = vpack.c.bf16 %v118_v32, %v116_v31  ;;  %v2725_v31 = vcombine.low %v167_v18, %v171_v19 }
  0x89   :  { %1028 = vmatpush1.bf16.msra.mxu1 %v2721_v33  ;;  %v2794_v33 = vcombine.high %v237_v26, %v241_v28  ;;  %v175_v26 = vld [vmem:[#allocation6 + $0x118] sm:$0xff] }
  0x8a   :  { %1029 = vmatprep.subr.bf16.mxu1 %v2730_v36  ;;  %v245_v36 = vld [vmem:[#allocation6 + $0x348] sm:$0xff]  ;;  %v179_v28 = vld [vmem:[#allocation6 + $0x138] sm:$0xff] }
  0x8b   :  { %v2801_v47 = vcombine.low %v245_v36, %v249_v37  ;;  %v2734_v32 = vcombine.high %v175_v26, %v179_v28 }
  0x8c   :  { %961 = vmatmul.mubr.bf16.gmra.mrb[8].mxu1 %v3526_v41  ;;  %1187 = vmatmul.mubr.bf16.gmra.mrb[8].mxu0 %v3526_v41 }
  0x8d   :  { %1030 = vmatpush1.bf16.msra.mxu1 %v2729_v42  ;;  %970 = vmatprep.mubr.bf16.mxu1 %v3528_v43  ;;  %v2802_v42 = vcombine.high %v245_v36, %v249_v37  ;;  %v3013_v36 = vld [vmem:[#allocation8 + $0x64] ss:$8 sps:$4 sm:$0xff]   ;;  %v2733_v37 = vcombine.low %v175_v26, %v179_v28  ;;  %v3029_v28 = vld [vmem:[#allocation8 + $0xc0] ss:$8 sps:$4 sm:$0xff]  }
  0x8e   :  { %1031 = vmatprep.subr.bf16.mxu1 %v2738_v44  ;;  %1196 = vmatprep.mubr.bf16.mxu0 %v3528_v43  ;;  %v253_v44 = vld [vmem:[#allocation6 + $0x388] sm:$0xff] }
  0x8f   :  { %v2810_v50 = vcombine.high %v253_v44, %v257_v45  ;;  %v2809_v54 = vcombine.low %v253_v44, %v257_v45  ;;  %v191_v44 = vld [vmem:[#allocation6 + $0x198] sm:$0xff]  ;;  %v3031_v26 = vld [vmem:[#allocation8 + $0xc4] ss:$8 sps:$4 sm:$0xff]  }
  0x90   :  { %v195_v45 = vld [vmem:[#allocation6 + $0x1b8] sm:$0xff] }
  0x91   :  { %1032 = vmatpush1.bf16.msra.mxu1 %v2737_v48  ;;  %v120_v48 = vld [vmem:[#allocation3 + $0xe0] sm:$0xff] }
  0x92   :  { %1033 = vmatprep.subr.bf16.mxu1 %v2746_v51  ;;  %v261_v51 = vld [vmem:[#allocation6 + $0x3c8] sm:$0xff]  ;;  %v3566_v53 = vpack.c.bf16 %v122_v49, %v120_v48  ;;  %v2750_v48 = vcombine.high %v191_v44, %v195_v45  ;;  %v3016_v49 = vld [vmem:[#allocation8 + $0x74] ss:$8 sps:$4 sm:$0xff]  }
  0x93   :  { %v2818_v55 = vcombine.high %v261_v51, %v265_v52  ;;  %v2817_v63 = vcombine.low %v261_v51, %v265_v52  ;;  %v203_v51 = vld [vmem:[#allocation6 + $0x1f8] sm:$0xff] }
  0x94   :  { %971 = vmatmul.mubr.bf16.gmra.mrb[12].mxu1 %v3534_v56  ;;  %1197 = vmatmul.mubr.bf16.gmra.mrb[12].mxu0 %v3534_v56  ;;  %v3014_v52 = vld [vmem:[#allocation8 + $0x70] ss:$8 sps:$4 sm:$0xff]  }
  0x95   :  { %1034 = vmatpush1.bf16.msra.mxu1 %v2745_v57  ;;  %980 = vmatprep.mubr.bf16.mxu1 %v3536_v58  ;;  %v2995_v57 = vld [vmem:[#allocation8 + $0x4] ss:$8 sps:$4 sm:$0xff]  }
  0x96   :  { %1035 = vmatprep.subr.bf16.mxu1 %v2754_v59  ;;  %1206 = vmatprep.mubr.bf16.mxu0 %v3536_v58  ;;  %v143_v59 = vld [vmem:[#allocation6 + $0x18] sm:$0xff] }
  0x97   :  { %2320 = vmatprep.subr.bf16.mxu0 %v2995_v57  ;;  %v2702_v0 = vcombine.high %v143_v59, %v147_v60  ;;  %v2701_v5 = vcombine.low %v143_v59, %v147_v60  ;;  %v3019_v57 = vld [vmem:[#allocation8 + $0x84] ss:$8 sps:$4 sm:$0xff]   ;;  %v207_v59 = vld [vmem:[#allocation6 + $0x218] sm:$0xff] }
  0x98   :  { %2321 = vmatpush1.bf16.msra.mxu0 %v2993_v61  ;;  %v211_v60 = vld [vmem:[#allocation6 + $0x238] sm:$0xff]  ;;  %v3017_v61 = vld [vmem:[#allocation8 + $0x80] ss:$8 sps:$4 sm:$0xff]  }
  0x99   :  { %1036 = vmatpush1.bf16.msra.mxu1 %v2753_v62  ;;  %v2998_v62 = vld [vmem:[#allocation8 + $0x14] ss:$8 sps:$4 sm:$0xff]  }
  0x9a   :  { %1037 = vmatprep.subr.bf16.mxu1 %v2762_v1  ;;  %v2996_v1 = vld [vmem:[#allocation8 + $0x10] ss:$8 sps:$4 sm:$0xff]   ;;  %2322 = vmatprep.subr.bf16.mxu0 %v2998_v62 }
  0x9c   :  { %981 = vmatmul.mubr.bf16.gmra.mrb[16].mxu1 %v3542_v6  ;;  %1207 = vmatmul.mubr.bf16.gmra.mrb[16].mxu0 %v3542_v6 }
  0x9d   :  { %1038 = vmatpush1.bf16.msra.mxu1 %v2761_v7  ;;  %990 = vmatprep.mubr.bf16.mxu1 %v3544_v8  ;;  %v2710_v7 = vcombine.high %v151_v2, %v155_v3  ;;  %v219_v2 = vld [vmem:[#allocation6 + $0x278] sm:$0xff] }
  0x9e   :  { %1039 = vmatprep.subr.bf16.mxu1 %v2770_v9  ;;  %1216 = vmatprep.mubr.bf16.mxu0 %v3544_v8  ;;  %v2999_v9 = vld [vmem:[#allocation8 + $0x20] ss:$8 sps:$4 sm:$0xff]   ;;  %v3020_v3 = vld [vmem:[#allocation8 + $0x90] ss:$8 sps:$4 sm:$0xff]  }
  0x9f   :  { %2323 = vmatpush1.bf16.msra.mxu0 %v2996_v1  ;;  %v215_v1 = vld [vmem:[#allocation6 + $0x258] sm:$0xff] }
  0xa0   :  { %2324 = vmatprep.subr.bf16.mxu0 %v3001_v4  ;;  %v2765_v4 = vcombine.low %v207_v59, %v211_v60 }
  0xa1   :  { %1040 = vmatpush1.bf16.msra.mxu1 %v2769_v13  ;;  %v3004_v13 = vld [vmem:[#allocation8 + $0x34] ss:$8 sps:$4 sm:$0xff]  }
  0xa2   :  { %1041 = vmatprep.subr.bf16.mxu1 %v2778_v17  ;;  %v3002_v17 = vld [vmem:[#allocation8 + $0x30] ss:$8 sps:$4 sm:$0xff]  }
  0xa3   :  { %2325 = vmatpush1.bf16.msra.mxu0 %v2999_v9  ;;  %v223_v9 = vld [vmem:[#allocation6 + $0x298] sm:$0xff] }
  0xa4   :  { %991 = vmatmul.mubr.bf16.gmra.mrb[20].mxu1 %v3550_v22  ;;  %1217 = vmatmul.mubr.bf16.gmra.mrb[20].mxu0 %v3550_v22 }
  0xa5   :  { %1042 = vmatpush1.bf16.msra.mxu1 %v2777_v23  ;;  %1000 = vmatprep.mubr.bf16.mxu1 %v3552_v24  ;;  %v2726_v23 = vcombine.high %v167_v18, %v171_v19  ;;  %v3028_v18 = vld [vmem:[#allocation8 + $0xb4] ss:$8 sps:$4 sm:$0xff]   ;;  %v3026_v19 = vld [vmem:[#allocation8 + $0xb0] ss:$8 sps:$4 sm:$0xff]  }
  0xa6   :  { %1043 = vmatprep.subr.bf16.mxu1 %v2786_v25  ;;  %1226 = vmatprep.mubr.bf16.mxu0 %v3552_v24  ;;  %v3005_v25 = vld [vmem:[#allocation8 + $0x40] ss:$8 sps:$4 sm:$0xff]  }
  0xa7   :  { %2326 = vmatprep.subr.bf16.mxu0 %v3004_v13  ;;  %v2773_v13 = vcombine.low %v215_v1, %v219_v2 }
  0xa8   :  { %2327 = vmatpush1.bf16.msra.mxu0 %v3002_v17  ;;  %v235_v17 = vld [vmem:[#allocation6 + $0x2f8] sm:$0xff] }
  0xa9   :  { %1044 = vmatpush1.bf16.msra.mxu1 %v2785_v30  ;;  %2328 = vmatprep.subr.bf16.mxu0 %v3007_v20  ;;  %v3010_v30 = vld [vmem:[#allocation8 + $0x54] ss:$8 sps:$4 sm:$0xff]   ;;  %v2781_v20 = vcombine.low %v223_v9, %v227_v10 }
  0xaa   :  { %1045 = vmatprep.subr.bf16.mxu1 %v2794_v33  ;;  %v3008_v33 = vld [vmem:[#allocation8 + $0x50] ss:$8 sps:$4 sm:$0xff]  }
  0xac   :  { %1001 = vmatmul.mubr.bf16.gmra.mrb[24].mxu1 %v3558_v38  ;;  %1227 = vmatmul.mubr.bf16.gmra.mrb[24].mxu0 %v3558_v38 }
  0xad   :  { %1046 = vmatpush1.bf16.msra.mxu1 %v2793_v39  ;;  %1010 = vmatprep.mubr.bf16.mxu1 %v3560_v40  ;;  %v2742_v39 = vcombine.high %v183_v34, %v187_v35 }
  0xae   :  { %1047 = vmatprep.subr.bf16.mxu1 %v2802_v42  ;;  %1236 = vmatprep.mubr.bf16.mxu0 %v3560_v40  ;;  %v3011_v42 = vld [vmem:[#allocation8 + $0x60] ss:$8 sps:$4 sm:$0xff]  }
  0xaf   :  { %2329 = vmatpush1.bf16.msra.mxu0 %v3005_v25  ;;  %v243_v25 = vld [vmem:[#allocation6 + $0x338] sm:$0xff] }
  0xb0   :  { %2330 = vmatprep.subr.bf16.mxu0 %v3010_v30 }
  0xb1   :  { %1048 = vmatpush1.bf16.msra.mxu1 %v2801_v47  ;;  %v2741_v47 = vcombine.low %v183_v34, %v187_v35  ;;  %v3034_v34 = vld [vmem:[#allocation8 + $0xd4] ss:$8 sps:$4 sm:$0xff]   ;;  %v3032_v35 = vld [vmem:[#allocation8 + $0xd0] ss:$8 sps:$4 sm:$0xff]  }
  0xb2   :  { %1049 = vmatprep.subr.bf16.mxu1 %v2810_v50  ;;  %v199_v50 = vld [vmem:[#allocation6 + $0x1d8] sm:$0xff] }
  0xb3   :  { %2331 = vmatpush1.bf16.msra.mxu0 %v3008_v33  ;;  %v2757_v62 = vcombine.low %v199_v50, %v203_v51  ;;  %v251_v33 = vld [vmem:[#allocation6 + $0x378] sm:$0xff] }
  0xb4   :  { %1011 = vmatmul.mubr.bf16.gmra.mrb[28].mxu1 %v3566_v53  ;;  %1237 = vmatmul.mubr.bf16.gmra.mrb[28].mxu0 %v3566_v53 }
  0xb5   :  { %1050 = vmatpush1.bf16.msra.mxu1 %v2809_v54  ;;  %1053 = vmatprep.mubr.bf16.mxu1 %v3508_v46  ;;  %v2749_v54 = vcombine.low %v191_v44, %v195_v45  ;;  %v3037_v44 = vld [vmem:[#allocation8 + $0xe4] ss:$8 sps:$4 sm:$0xff]   ;;  %v3035_v45 = vld [vmem:[#allocation8 + $0xe0] ss:$8 sps:$4 sm:$0xff]  }
  0xb6   :  { %1051 = vmatprep.subr.bf16.mxu1 %v2818_v55  ;;  %2332 = vmatprep.subr.bf16.mxu0 %v3013_v36  ;;  %v2758_v55 = vcombine.high %v199_v50, %v203_v51  ;;  %v267_v50 = vld [vmem:[#allocation6 + $0x3f8] sm:$0xff] }
  0xb7   :  { %2333 = vmatpush1.bf16.msra.mxu0 %v3011_v42  ;;  %v259_v42 = vld [vmem:[#allocation6 + $0x3b8] sm:$0xff] }
  0xb8   :  { %2334 = vmatprep.subr.bf16.mxu0 %v3016_v49  ;;  %v263_v49 = vld [vmem:[#allocation6 + $0x3d8] sm:$0xff] }
  0xb9   :  { %1052 = vmatpush1.bf16.msra.mxu1 %v2817_v63  ;;  %v2766_v63 = vcombine.high %v207_v59, %v211_v60  ;;  %v3040_v51 = vld [vmem:[#allocation8 + $0xf4] ss:$8 sps:$4 sm:$0xff]   ;;  %v3043_v59 = vld [vmem:[#allocation8 + $0x104] ss:$8 sps:$4 sm:$0xff]  }
  0xba   :  { %1247 = vmatprep.subr.bf16.mxu1 %v2702_v0  ;;  %v3022_v0 = vld [vmem:[#allocation8 + $0x94] ss:$8 sps:$4 sm:$0xff]  }
  0xbb   :  { %2335 = vmatpush1.bf16.msra.mxu0 %v3014_v52 }
  0xbc   :  { %1054 = vmatmul.mubr.bf16.vlgmr.msra.gmra.mrb[32].mxu1 %v3512_v12  ;;  %2336 = vmatprep.subr.bf16.mxu0 %v3019_v57  ;;  %v2821_v57 = vcombine.low %v263_v49, %v267_v50 }
  0xbd   :  { %1248 = vmatpush1.bf16.msra.mxu1 %v2701_v5  ;;  %1063 = vmatprep.mubr.bf16.mxu1 %v3514_v14  ;;  %v2774_v5 = vcombine.high %v215_v1, %v219_v2 }
  0xbe   :  { %1249 = vmatprep.subr.bf16.mxu1 %v2710_v7  ;;  %v3025_v7 = vld [vmem:[#allocation8 + $0xa4] ss:$8 sps:$4 sm:$0xff]  }
  0xbf   :  { %2337 = vmatpush1.bf16.msra.mxu0 %v3017_v61 }
  0xc0   :  { %2338 = vmatprep.subr.bf16.mxu0 %v3022_v0 }
  0xc1   :  { %1250 = vmatpush1.bf16.msra.mxu1 %v2709_v15  ;;  %v2782_v15 = vcombine.high %v223_v9, %v227_v10 }
  0xc2   :  { %1251 = vmatprep.subr.bf16.mxu1 %v2718_v16  ;;  %v231_v16 = vld [vmem:[#allocation6 + $0x2d8] sm:$0xff] }
  0xc3   :  { %2339 = vmatpush1.bf16.msra.mxu0 %v3020_v3  ;;  %v2789_v30 = vcombine.low %v231_v16, %v235_v17 }
  0xc4   :  { %1064 = vmatmul.mubr.bf16.gmra.mrb[36].mxu1 %v3518_v27  ;;  %2340 = vmatprep.subr.bf16.mxu0 %v3025_v7 }
  0xc5   :  { %1252 = vmatpush1.bf16.msra.mxu1 %v2717_v21  ;;  %1073 = vmatprep.mubr.bf16.mxu1 %v3520_v29  ;;  %v2790_v21 = vcombine.high %v231_v16, %v235_v17 }
  0xc6   :  { %1253 = vmatprep.subr.bf16.mxu1 %v2726_v23  ;;  %v239_v23 = vld [vmem:[#allocation6 + $0x318] sm:$0xff] }
  0xc7   :  { %2341 = vmatpush1.bf16.msra.mxu0 %v3023_v11  ;;  %v2797_v36 = vcombine.low %v239_v23, %v243_v25 }
  0xc8   :  { %2342 = vmatprep.subr.bf16.mxu0 %v3028_v18 }
  0xc9   :  { %1254 = vmatpush1.bf16.msra.mxu1 %v2725_v31  ;;  %v2798_v31 = vcombine.high %v239_v23, %v243_v25 }
  0xca   :  { %1255 = vmatprep.subr.bf16.mxu1 %v2734_v32  ;;  %v247_v32 = vld [vmem:[#allocation6 + $0x358] sm:$0xff] }
  0xcb   :  { %2343 = vmatpush1.bf16.msra.mxu0 %v3026_v19 }
  0xcc   :  { %1074 = vmatmul.mubr.bf16.gmra.mrb[40].mxu1 %v3526_v41  ;;  %2344 = vmatprep.subr.bf16.mxu0 %v3031_v26 }
  0xcd   :  { %1256 = vmatpush1.bf16.msra.mxu1 %v2733_v37  ;;  %1083 = vmatprep.mubr.bf16.mxu1 %v3528_v43  ;;  %v2806_v37 = vcombine.high %v247_v32, %v251_v33 }
  0xce   :  { %1257 = vmatprep.subr.bf16.mxu1 %v2742_v39  ;;  %v255_v39 = vld [vmem:[#allocation6 + $0x398] sm:$0xff] }
  0xcf   :  { %2345 = vmatpush1.bf16.msra.mxu0 %v3029_v28  ;;  %v2813_v52 = vcombine.low %v255_v39, %v259_v42 }
  0xd0   :  { %2346 = vmatprep.subr.bf16.mxu0 %v3034_v34 }
  0xd1   :  { %1258 = vmatpush1.bf16.msra.mxu1 %v2741_v47  ;;  %v2805_v47 = vcombine.low %v247_v32, %v251_v33 }
  0xd2   :  { %1259 = vmatprep.subr.bf16.mxu1 %v2750_v48  ;;  %v2814_v48 = vcombine.high %v255_v39, %v259_v42 }
  0xd3   :  { %2347 = vmatpush1.bf16.msra.mxu0 %v3032_v35 }
  0xd4   :  { %1084 = vmatmul.mubr.bf16.gmra.mrb[44].mxu1 %v3534_v56  ;;  %2348 = vmatprep.subr.bf16.mxu0 %v3037_v44 }
  0xd5   :  { %1260 = vmatpush1.bf16.msra.mxu1 %v2749_v54  ;;  %1093 = vmatprep.mubr.bf16.mxu1 %v3536_v58  ;;  %v3038_v54 = vld [vmem:[#allocation8 + $0xf0] ss:$8 sps:$4 sm:$0xff]  }
  0xd6   :  { %1261 = vmatprep.subr.bf16.mxu1 %v2758_v55  ;;  %v2822_v55 = vcombine.high %v263_v49, %v267_v50 }
  0xd7   :  { %2349 = vmatpush1.bf16.msra.mxu0 %v3035_v45 }
  0xd8   :  { %2350 = vmatprep.subr.bf16.mxu0 %v3040_v51 }
  0xd9   :  { %1262 = vmatpush1.bf16.msra.mxu1 %v2757_v62 }
  0xda   :  { %1263 = vmatprep.subr.bf16.mxu1 %v2766_v63 }
  0xdb   :  { %2351 = vmatpush1.bf16.msra.mxu0 %v3038_v54 }
  0xdc   :  { %1094 = vmatmul.mubr.bf16.gmra.mrb[48].mxu1 %v3542_v6  ;;  %2433 = vmatprep.subr.bf16.mxu0 %v3043_v59 }
  0xdd   :  { %1264 = vmatpush1.bf16.msra.mxu1 %v2765_v4  ;;  %1103 = vmatprep.mubr.bf16.mxu1 %v3544_v8 }
  0xde   :  { %1265 = vmatprep.subr.bf16.mxu1 %v2774_v5 }
  0xe1   :  { %1266 = vmatpush1.bf16.msra.mxu1 %v2773_v13 }
  0xe2   :  { %1267 = vmatprep.subr.bf16.mxu1 %v2782_v15 }
  0xe4   :  { %1104 = vmatmul.mubr.bf16.gmra.mrb[52].mxu1 %v3550_v22 }
  0xe5   :  { %1268 = vmatpush1.bf16.msra.mxu1 %v2781_v20  ;;  %1113 = vmatprep.mubr.bf16.mxu1 %v3552_v24 }
  0xe6   :  { %1269 = vmatprep.subr.bf16.mxu1 %v2790_v21 }
  0xe9   :  { %1270 = vmatpush1.bf16.msra.mxu1 %v2789_v30 }
  0xea   :  { %1271 = vmatprep.subr.bf16.mxu1 %v2798_v31 }
  0xec   :  { %1114 = vmatmul.mubr.bf16.gmra.mrb[56].mxu1 %v3558_v38 }
  0xed   :  { %1272 = vmatpush1.bf16.msra.mxu1 %v2797_v36  ;;  %1123 = vmatprep.mubr.bf16.mxu1 %v3560_v40 }
  0xee   :  { %1273 = vmatprep.subr.bf16.mxu1 %v2806_v37 }
  0xf1   :  { %1274 = vmatpush1.bf16.msra.mxu1 %v2805_v47 }
  0xf2   :  { %1275 = vmatprep.subr.bf16.mxu1 %v2814_v48 }
  0xf4   :  { %1124 = vmatmul.mubr.bf16.gmra.mrb[60].mxu1 %v3566_v53 }
  0xf5   :  { %1276 = vmatpush1.bf16.msra.mxu1 %v2813_v52  ;;  %1279 = vmatprep.mubr.bf16.mxu1 %v3508_v46 }
  0xf6   :  { %1277 = vmatprep.subr.bf16.mxu1 %v2822_v55 }
  0xf9   :  { %1278 = vmatpush1.bf16.msra.mxu1 %v2821_v57 }
  0xfc   :  { %1280 = vmatmul.mubr.bf16.vlgmr.msra.gmra.mrb[64].mxu1 %v3512_v12 }
  0xfd   :  { %1289 = vmatprep.mubr.bf16.mxu1 %v3514_v14 }
 0x104   :  { %1290 = vmatmul.mubr.bf16.gmra.mrb[68].mxu1 %v3518_v27 }
 0x105   :  { %1299 = vmatprep.mubr.bf16.mxu1 %v3520_v29 }
 0x10c   :  { %1300 = vmatmul.mubr.bf16.gmra.mrb[72].mxu1 %v3526_v41 }
 0x10d   :  { %1309 = vmatprep.mubr.bf16.mxu1 %v3528_v43 }
 0x114   :  { %1310 = vmatmul.mubr.bf16.gmra.mrb[76].mxu1 %v3534_v56 }
 0x115   :  { %1319 = vmatprep.mubr.bf16.mxu1 %v3536_v58 }
 0x11c   :  { %1320 = vmatmul.mubr.bf16.gmra.mrb[80].mxu1 %v3542_v6 }
 0x11d   :  { %1329 = vmatprep.mubr.bf16.mxu1 %v3544_v8 }
 0x124   :  { %1330 = vmatmul.mubr.bf16.gmra.mrb[84].mxu1 %v3550_v22 }
 0x125   :  { %1339 = vmatprep.mubr.bf16.mxu1 %v3552_v24 }
 0x12c   :  { %1340 = vmatmul.mubr.bf16.gmra.mrb[88].mxu1 %v3558_v38 }
 0x12d   :  { %1349 = vmatprep.mubr.bf16.mxu1 %v3560_v40 }
 0x134   :  { %1350 = vmatmul.mubr.bf16.gmra.mrb[92].mxu1 %v3566_v53 }
 0x14f   :  { %v3604_v46 = vpop.f32.mrb[0].mxu1  ;;  %v3616_v58 = vpop.f32.mrb[0].mxu0 }
 0x150   :  { %v2823_v12 = vmul.f32 -1.442695, %v3604_v46  ;;  %v3607_v14 = vpop.f32.mrb[1].mxu1  ;;  %v3618_v6 = vpop.f32.mrb[1].mxu0 }
 0x151   :  { %v2824_v27 = vmul.f32 -1.442695, %v3607_v14  ;;  %v3610_v29 = vpop.f32.mrb[2].mxu1  ;;  %v3620_v8 = vpop.f32.mrb[2].mxu0 }
 0x152   :  { %3089 = vpow2.f32 %v2823_v12  ;;  %v2827_v41 = vmul.f32 -1.442695, %v3610_v29  ;;  %v3613_v43 = vpop.f32.mrb[3].mxu1  ;;  %v3624_v24 = vpop.f32.mrb[3].mxu0 }
 0x153   :  { %3091 = vpow2.f32 %v2824_v27  ;;  %v2828_v56 = vmul.f32 -1.442695, %v3613_v43 }
 0x154   :  { %3093 = vpow2.f32 %v2827_v41 }
 0x155   :  { %3095 = vpow2.f32 %v2828_v56 }
 0x157   :  { %v3622_v22 = vpop.f32.mrb[4].mxu1  ;;  %v3636_v1 = vpop.f32.mrb[4].mxu0 }
 0x158   :  { %v2831_v38 = vmul.f32 -1.442695, %v3622_v22  ;;  %v3627_v40 = vpop.f32.mrb[5].mxu1  ;;  %v3638_v4 = vpop.f32.mrb[5].mxu0 }
 0x159   :  { %v2832_v53 = vmul.f32 -1.442695, %v3627_v40  ;;  %v3630_v60 = vpop.f32.mrb[6].mxu1  ;;  %v3640_v9 = vpop.f32.mrb[6].mxu0 }
 0x15a   :  { %3097 = vpow2.f32 %v2831_v38  ;;  %v2835_v61 = vmul.f32 -1.442695, %v3630_v60  ;;  %v3633_v62 = vpop.f32.mrb[7].mxu1  ;;  %v3644_v15 = vpop.f32.mrb[7].mxu0 }
 0x15b   :  { %3099 = vpow2.f32 %v2832_v53  ;;  %v2836_v63 = vmul.f32 -1.442695, %v3633_v62 }
 0x15c   :  { %v3090_v0 = vpop.eup %3089  ;;  %3101 = vpow2.f32 %v2835_v61 }
 0x15d   :  { %v3092_v2 = vpop.eup %3091  ;;  %v1552_v3 = vadd.f32 1.0, %v3090_v0  ;;  %3103 = vpow2.f32 %v2836_v63 }
 0x15e   :  { %v3094_v5 = vpop.eup %3093  ;;  %v1553_v7 = vadd.f32 1.0, %v3092_v2 }
 0x15f   :  { %v3096_v10 = vpop.eup %3095  ;;  %3105 = vrcp.f32 %v1552_v3  ;;  %v1556_v11 = vadd.f32 1.0, %v3094_v5  ;;  %v3642_v13 = vpop.f32.mrb[8].mxu1 }
 0x160   :  { %3107 = vrcp.f32 %v1553_v7  ;;  %v1557_v16 = vadd.f32 1.0, %v3096_v10  ;;  %v2839_v17 = vmul.f32 -1.442695, %v3642_v13  ;;  %v3647_v18 = vpop.f32.mrb[9].mxu1  ;;  %v3656_v28 = vpop.f32.mrb[8].mxu0 }
 0x161   :  { %3109 = vrcp.f32 %v1556_v11  ;;  %v2840_v19 = vmul.f32 -1.442695, %v3647_v18  ;;  %v3650_v20 = vpop.f32.mrb[10].mxu1  ;;  %v3658_v32 = vpop.f32.mrb[9].mxu0 }
 0x162   :  { %3111 = vrcp.f32 %v1557_v16  ;;  %v2843_v21 = vmul.f32 -1.442695, %v3650_v20  ;;  %v3653_v23 = vpop.f32.mrb[11].mxu1  ;;  %v3660_v35 = vpop.f32.mrb[10].mxu0 }
 0x163   :  { %3113 = vpow2.f32 %v2839_v17  ;;  %v2844_v25 = vmul.f32 -1.442695, %v3653_v23  ;;  %v3664_v42 = vpop.f32.mrb[11].mxu0 }
 0x164   :  { %v3098_v26 = vpop.eup %3097  ;;  %3115 = vpow2.f32 %v2840_v19 }
 0x165   :  { %v3100_v30 = vpop.eup %3099  ;;  %v1560_v31 = vadd.f32 1.0, %v3098_v26  ;;  %3117 = vpow2.f32 %v2843_v21 }
 0x166   :  { %v3102_v33 = vpop.eup %3101  ;;  %v1561_v34 = vadd.f32 1.0, %v3100_v30  ;;  %3119 = vpow2.f32 %v2844_v25 }
 0x167   :  { %v3104_v36 = vpop.eup %3103  ;;  %3121 = vrcp.f32 %v1560_v31  ;;  %v1564_v37 = vadd.f32 1.0, %v3102_v33  ;;  %v3662_v39 = vpop.f32.mrb[12].mxu1 }
 0x168   :  { %3123 = vrcp.f32 %v1561_v34  ;;  %v1565_v44 = vadd.f32 1.0, %v3104_v36  ;;  %v2847_v45 = vmul.f32 -1.442695, %v3662_v39  ;;  %v3667_v47 = vpop.f32.mrb[13].mxu1  ;;  %v3680_v38 = vpop.f32.mrb[12].mxu0 }
 0x169   :  { %v3106_v48 = vpop.eup %3105  ;;  %3125 = vrcp.f32 %v1564_v37  ;;  %v2848_v49 = vmul.f32 -1.442695, %v3667_v47  ;;  %v3670_v50 = vpop.f32.mrb[14].mxu1  ;;  %v3046_v36 = vld [vmem:[#allocation8 + $0x114] ss:$8 sps:$4 sm:$0xff]  }
 0x16a   :  { %v3108_v51 = vpop.eup %3107  ;;  %v1744_v52 = vmul.f32 %v3106_v48, %v3604_v46  ;;  %3127 = vrcp.f32 %v1565_v44  ;;  %v2851_v54 = vmul.f32 -1.442695, %v3670_v50  ;;  %v3674_v55 = vpop.f32.mrb[15].mxu1 }
 0x16b   :  { %v3110_v57 = vpop.eup %3109  ;;  %v1745_v59 = vmul.f32 %v3108_v51, %v3607_v14  ;;  %3129 = vpow2.f32 %v2847_v45  ;;  %v2852_v12 = vmul.f32 -1.442695, %v3674_v55  ;;  %v3684_v63 = vpop.f32.mrb[13].mxu0 }
 0x16c   :  { %v3112_v27 = vpop.eup %3111  ;;  %v1748_v41 = vmul.f32 %v3110_v57, %v3610_v29  ;;  %3131 = vpow2.f32 %v2848_v49  ;;  %v1808_v56 = vmul.f32 %v1744_v52, %v3616_v58  ;;  %v3687_v3 = vpop.f32.mrb[14].mxu0 }
 0x16d   :  { %v3114_v46 = vpop.eup %3113  ;;  %v1749_v53 = vmul.f32 %v3112_v27, %v3613_v43  ;;  %3133 = vpow2.f32 %v2851_v54  ;;  %v1809_v61 = vmul.f32 %v1745_v59, %v3618_v6  ;;  %v3692_v10 = vpop.f32.mrb[15].mxu0  ;;  %v3044_v59 = vld [vmem:[#allocation8 + $0x110] ss:$8 sps:$4 sm:$0xff]  }
 0x16e   :  { %v3116_v14 = vpop.eup %3115  ;;  %v1568_v0 = vadd.f32 1.0, %v3114_v46  ;;  %3135 = vpow2.f32 %v2852_v12  ;;  %v1812_v2 = vmul.f32 %v1748_v41, %v3620_v8 }
 0x16f   :  { %v3118_v29 = vpop.eup %3117  ;;  %v1569_v5 = vadd.f32 1.0, %v3116_v14  ;;  %v1813_v58 = vmul.f32 %v1749_v53, %v3624_v24  ;;  %v3690_v7 = vpop.f32.mrb[16].mxu1  ;;  %v3041_v24 = vld [vmem:[#allocation8 + $0x100] ss:$8 sps:$4 sm:$0xff]  }
 0x170   :  { %v3120_v43 = vpop.eup %3119  ;;  %3137 = vrcp.f32 %v1568_v0  ;;  %v1572_v6 = vadd.f32 1.0, %v3118_v29  ;;  %v1904_v11 = vpack.c.bf16 %v1812_v2, %v1808_v56  ;;  %v2855_v16 = vmul.f32 -1.442695, %v3690_v7  ;;  %v3695_v17 = vpop.f32.mrb[17].mxu1 }
 0x171   :  { %v3122_v19 = vpop.eup %3121  ;;  %3139 = vrcp.f32 %v1569_v5  ;;  %v1573_v8 = vadd.f32 1.0, %v3120_v43  ;;  %v1905_v21 = vpack.c.bf16 %v1813_v58, %v1809_v61  ;;  %v2856_v25 = vmul.f32 -1.442695, %v3695_v17  ;;  %v3698_v26 = vpop.f32.mrb[18].mxu1 }
 0x172   :  { %v3124_v30 = vpop.eup %3123  ;;  %v1752_v31 = vmul.f32 %v3122_v19, %v3622_v22  ;;  %3141 = vrcp.f32 %v1572_v6  ;;  %v2859_v33 = vmul.f32 -1.442695, %v3698_v26  ;;  %v3702_v34 = vpop.f32.mrb[19].mxu1  ;;  %v3052_v19 = vld [vmem:[#allocation8 + $0x134] ss:$8 sps:$4 sm:$0xff]  }
 0x173   :  { %v3126_v37 = vpop.eup %3125  ;;  %v1753_v44 = vmul.f32 %v3124_v30, %v3627_v40  ;;  %3143 = vrcp.f32 %v1573_v8  ;;  %v2860_v45 = vmul.f32 -1.442695, %v3702_v34  ;;  %2352 = vmatprep.mubr.bf16.mxu0 %v1905_v21  ;;  %v3708_v22 = vpop.f32.mrb[16].mxu0 }
 0x174   :  { %v3128_v48 = vpop.eup %3127  ;;  %v1756_v49 = vmul.f32 %v3126_v37, %v3630_v60  ;;  %3145 = vpow2.f32 %v2855_v16  ;;  %v1816_v51 = vmul.f32 %v1752_v31, %v3636_v1  ;;  %2353 = vmatmul.mubr.bf16.vlgmr.msra.gmra.mrb[32].mxu0 %v1904_v11  ;;  %v3712_v40 = vpop.f32.mrb[17].mxu0  ;;  %v3049_v1 = vld [vmem:[#allocation8 + $0x124] ss:$8 sps:$4 sm:$0xff]  }
 0x175   :  { %v3130_v52 = vpop.eup %3129  ;;  %v1757_v54 = vmul.f32 %v3128_v48, %v3633_v62  ;;  %3147 = vpow2.f32 %v2856_v25  ;;  %v1817_v57 = vmul.f32 %v1753_v44, %v3638_v4  ;;  %2434 = vmatpush1.bf16.msra.mxu0 %v3041_v24  ;;  %v3715_v41 = vpop.f32.mrb[18].mxu0 }
 0x176   :  { %v3132_v12 = vpop.eup %3131  ;;  %v1576_v27 = vadd.f32 1.0, %v3130_v52  ;;  %3149 = vpow2.f32 %v2859_v33  ;;  %v1820_v60 = vmul.f32 %v1756_v49, %v3640_v9  ;;  %2435 = vmatprep.subr.bf16.mxu0 %v3046_v36  ;;  %v3720_v4 = vpop.f32.mrb[19].mxu0 }
 0x177   :  { %v3134_v56 = vpop.eup %3133  ;;  %v1577_v46 = vadd.f32 1.0, %v3132_v12  ;;  %3151 = vpow2.f32 %v2860_v45  ;;  %v1821_v62 = vmul.f32 %v1757_v54, %v3644_v15  ;;  %v3718_v53 = vpop.f32.mrb[20].mxu1  ;;  %v3047_v15 = vld [vmem:[#allocation8 + $0x120] ss:$8 sps:$4 sm:$0xff]  }
 0x178   :  { %v3136_v61 = vpop.eup %3135  ;;  %3153 = vrcp.f32 %v1576_v27  ;;  %v1580_v14 = vadd.f32 1.0, %v3134_v56  ;;  %v1908_v0 = vpack.c.bf16 %v1820_v60, %v1816_v51  ;;  %v2863_v2 = vmul.f32 -1.442695, %v3718_v53  ;;  %v3723_v9 = vpop.f32.mrb[21].mxu1  ;;  %v3055_v51 = vld [vmem:[#allocation8 + $0x144] ss:$8 sps:$4 sm:$0xff]  }
 0x179   :  { %3155 = vrcp.f32 %v1577_v46  ;;  %v1581_v29 = vadd.f32 1.0, %v3136_v61  ;;  %v1909_v5 = vpack.c.bf16 %v1821_v62, %v1817_v57  ;;  %v2864_v58 = vmul.f32 -1.442695, %v3723_v9  ;;  %v3726_v43 = vpop.f32.mrb[22].mxu1  ;;  %2436 = vmatpush1.bf16.msra.mxu0 %v3044_v59  ;;  %v3734_v31 = vpop.f32.mrb[20].mxu0 }
 0x17a   :  { %v3138_v6 = vpop.eup %3137  ;;  %3157 = vrcp.f32 %v1580_v14  ;;  %v2867_v11 = vmul.f32 -1.442695, %v3726_v43  ;;  %v3729_v16 = vpop.f32.mrb[23].mxu1  ;;  %2437 = vmatprep.subr.bf16.mxu0 %v3049_v1 }
 0x17b   :  { %v3140_v8 = vpop.eup %3139  ;;  %v1760_v21 = vmul.f32 %v3138_v6, %v3642_v13  ;;  %3159 = vrcp.f32 %v1581_v29  ;;  %v2868_v25 = vmul.f32 -1.442695, %v3729_v16  ;;  %2362 = vmatprep.mubr.bf16.mxu0 %v1909_v5  ;;  %v3738_v44 = vpop.f32.mrb[21].mxu0  ;;  %v3050_v13 = vld [vmem:[#allocation8 + $0x130] ss:$8 sps:$4 sm:$0xff]  }
 0x17c   :  { %v3142_v24 = vpop.eup %3141  ;;  %v1761_v30 = vmul.f32 %v3140_v8, %v3647_v18  ;;  %3161 = vpow2.f32 %v2863_v2  ;;  %2363 = vmatmul.mubr.bf16.gmra.mrb[36].mxu0 %v1908_v0  ;;  %v3742_v49 = vpop.f32.mrb[22].mxu0 }
 0x17d   :  { %v3144_v33 = vpop.eup %3143  ;;  %v1764_v36 = vmul.f32 %v3142_v24, %v3650_v20  ;;  %3163 = vpow2.f32 %v2864_v58  ;;  %v1824_v37 = vmul.f32 %v1760_v21, %v3656_v28  ;;  %2438 = vmatpush1.bf16.msra.mxu0 %v3047_v15  ;;  %v3747_v57 = vpop.f32.mrb[23].mxu0  ;;  %v3058_v58 = vld [vmem:[#allocation8 + $0x154] ss:$8 sps:$4 sm:$0xff]  }
 0x17e   :  { %v3146_v45 = vpop.eup %3145  ;;  %v1765_v48 = vmul.f32 %v3144_v33, %v3653_v23  ;;  %3165 = vpow2.f32 %v2867_v11  ;;  %v1825_v18 = vmul.f32 %v1761_v30, %v3658_v32  ;;  %2439 = vmatprep.subr.bf16.mxu0 %v3052_v19 }
 0x17f   :  { %v3148_v52 = vpop.eup %3147  ;;  %v1584_v54 = vadd.f32 1.0, %v3146_v45  ;;  %3167 = vpow2.f32 %v2868_v25  ;;  %v1828_v20 = vmul.f32 %v1764_v36, %v3660_v35  ;;  %v3745_v28 = vpop.f32.mrb[24].mxu1  ;;  %v3056_v36 = vld [vmem:[#allocation8 + $0x150] ss:$8 sps:$4 sm:$0xff]  }
 0x180   :  { %v3150_v59 = vpop.eup %3149  ;;  %v1585_v12 = vadd.f32 1.0, %v3148_v52  ;;  %v1829_v23 = vmul.f32 %v1765_v48, %v3664_v42  ;;  %v3750_v27 = vpop.f32.mrb[25].mxu1  ;;  %v2871_v56 = vmul.f32 -1.442695, %v3745_v28  ;;  %v3053_v42 = vld [vmem:[#allocation8 + $0x140] ss:$8 sps:$4 sm:$0xff]  }
 0x181   :  { %v3152_v32 = vpop.eup %3151  ;;  %3169 = vrcp.f32 %v1584_v54  ;;  %v1588_v60 = vadd.f32 1.0, %v3150_v59  ;;  %v1912_v1 = vpack.c.bf16 %v1828_v20, %v1824_v37  ;;  %v3753_v46 = vpop.f32.mrb[26].mxu1  ;;  %2440 = vmatpush1.bf16.msra.mxu0 %v3050_v13  ;;  %v2872_v14 = vmul.f32 -1.442695, %v3750_v27  ;;  %v3061_v48 = vld [vmem:[#allocation8 + $0x164] ss:$8 sps:$4 sm:$0xff]  }
 0x182   :  { %v3154_v35 = vpop.eup %3153  ;;  %3171 = vrcp.f32 %v1585_v12  ;;  %v1589_v62 = vadd.f32 1.0, %v3152_v32  ;;  %v1913_v61 = vpack.c.bf16 %v1829_v23, %v1825_v18  ;;  %v3756_v0 = vpop.f32.mrb[27].mxu1  ;;  %2441 = vmatprep.subr.bf16.mxu0 %v3055_v51  ;;  %v2875_v5 = vmul.f32 -1.442695, %v3753_v46 }
 0x183   :  { %v3156_v2 = vpop.eup %3155  ;;  %v1768_v29 = vmul.f32 %v3154_v35, %v3662_v39  ;;  %3173 = vrcp.f32 %v1588_v60  ;;  %v2876_v11 = vmul.f32 -1.442695, %v3756_v0  ;;  %v3762_v19 = vpop.f32.mrb[24].mxu0  ;;  %v3064_v35 = vld [vmem:[#allocation8 + $0x174] ss:$8 sps:$4 sm:$0xff]  }
 0x184   :  { %v3158_v15 = vpop.eup %3157  ;;  %v1769_v6 = vmul.f32 %v3156_v2, %v3667_v47  ;;  %3175 = vrcp.f32 %v1589_v62  ;;  %2372 = vmatprep.mubr.bf16.mxu0 %v1913_v61  ;;  %v3766_v39 = vpop.f32.mrb[25].mxu0 }
 0x185   :  { %v3160_v8 = vpop.eup %3159  ;;  %v1772_v21 = vmul.f32 %v3158_v15, %v3670_v50  ;;  %3177 = vpow2.f32 %v2871_v56  ;;  %v1832_v25 = vmul.f32 %v1768_v29, %v3680_v38  ;;  %2373 = vmatmul.mubr.bf16.gmra.mrb[40].mxu0 %v1912_v1  ;;  %v3770_v33 = vpop.f32.mrb[26].mxu0  ;;  %v3059_v1 = vld [vmem:[#allocation8 + $0x160] ss:$8 sps:$4 sm:$0xff]  }
 0x186   :  { %v3162_v24 = vpop.eup %3161  ;;  %v1773_v30 = vmul.f32 %v3160_v8, %v3674_v55  ;;  %3179 = vpow2.f32 %v2872_v14  ;;  %v1833_v47 = vmul.f32 %v1769_v6, %v3684_v63  ;;  %2442 = vmatpush1.bf16.msra.mxu0 %v3053_v42  ;;  %v3775_v38 = vpop.f32.mrb[27].mxu0 }
 0x187   :  { %v3164_v37 = vpop.eup %3163  ;;  %v1592_v13 = vadd.f32 1.0, %v3162_v24  ;;  %3181 = vpow2.f32 %v2875_v5  ;;  %v1836_v50 = vmul.f32 %v1772_v21, %v3687_v3  ;;  %v3773_v45 = vpop.f32.mrb[28].mxu1  ;;  %2443 = vmatprep.subr.bf16.mxu0 %v3058_v58 }
 0x188   :  { %v3166_v18 = vpop.eup %3165  ;;  %v1593_v55 = vadd.f32 1.0, %v3164_v37  ;;  %3183 = vpow2.f32 %v2876_v11  ;;  %v1837_v63 = vmul.f32 %v1773_v30, %v3692_v10  ;;  %v3778_v51 = vpop.f32.mrb[29].mxu1  ;;  %v2879_v59 = vmul.f32 -1.442695, %v3773_v45  ;;  %v3062_v11 = vld [vmem:[#allocation8 + $0x170] ss:$8 sps:$4 sm:$0xff]  }
 0x189   :  { %v3168_v52 = vpop.eup %3167  ;;  %3185 = vrcp.f32 %v1592_v13  ;;  %v1596_v54 = vadd.f32 1.0, %v3166_v18  ;;  %v1916_v20 = vpack.c.bf16 %v1836_v50, %v1832_v25  ;;  %v3781_v3 = vpop.f32.mrb[30].mxu1  ;;  %v2880_v32 = vmul.f32 -1.442695, %v3778_v51  ;;  %v3067_v30 = vld [vmem:[#allocation8 + $0x184] ss:$8 sps:$4 sm:$0xff]  }
 0x18a   :  { %3187 = vrcp.f32 %v1593_v55  ;;  %v1597_v12 = vadd.f32 1.0, %v3168_v52  ;;  %v1917_v23 = vpack.c.bf16 %v1837_v63, %v1833_v47  ;;  %v3784_v60 = vpop.f32.mrb[31].mxu1  ;;  %2444 = vmatpush1.bf16.msra.mxu0 %v3056_v36  ;;  %v2883_v56 = vmul.f32 -1.442695, %v3781_v3  ;;  %v3789_v42 = vpop.f32.mrb[28].mxu0 }
 0x18b   :  { %v3170_v10 = vpop.eup %3169  ;;  %3189 = vrcp.f32 %v1596_v54  ;;  %2445 = vmatprep.subr.bf16.mxu0 %v3061_v48  ;;  %v2884_v14 = vmul.f32 -1.442695, %v3784_v60  ;;  %v3792_v5 = vpop.f32.mrb[29].mxu0 }
 0x18c   :  { %v3172_v62 = vpop.eup %3171  ;;  %v1776_v61 = vmul.f32 %v3170_v10, %v3690_v7  ;;  %3191 = vrcp.f32 %v1597_v12  ;;  %2382 = vmatprep.mubr.bf16.mxu0 %v1917_v23  ;;  %v3796_v7 = vpop.f32.mrb[30].mxu0 }
 0x18d   :  { %v3174_v2 = vpop.eup %3173  ;;  %v1777_v29 = vmul.f32 %v3172_v62, %v3695_v17  ;;  %3193 = vpow2.f32 %v2879_v59  ;;  %2383 = vmatmul.mubr.bf16.gmra.mrb[44].mxu0 %v1916_v20  ;;  %v3802_v24 = vpop.f32.mrb[31].mxu0 }
 0x18e   :  { %v3176_v58 = vpop.eup %3175  ;;  %v1780_v15 = vmul.f32 %v3174_v2, %v3698_v26  ;;  %3195 = vpow2.f32 %v2880_v32  ;;  %v1840_v6 = vmul.f32 %v1776_v61, %v3708_v22  ;;  %2446 = vmatpush1.bf16.msra.mxu0 %v3059_v1 }
 0x18f   :  { %v3178_v8 = vpop.eup %3177  ;;  %v1781_v21 = vmul.f32 %v3176_v58, %v3702_v34  ;;  %3197 = vpow2.f32 %v2883_v56  ;;  %v1841_v17 = vmul.f32 %v1777_v29, %v3712_v40  ;;  %v3800_v25 = vpop.f32.mrb[32].mxu1  ;;  %2447 = vmatprep.subr.bf16.mxu0 %v3064_v35 }
 0x190   :  { %v3180_v26 = vpop.eup %3179  ;;  %v1600_v47 = vadd.f32 1.0, %v3178_v8  ;;  %3199 = vpow2.f32 %v2884_v14  ;;  %v1844_v22 = vmul.f32 %v1780_v15, %v3715_v41  ;;  %v3805_v36 = vpop.f32.mrb[33].mxu1  ;;  %v3065_v41 = vld [vmem:[#allocation8 + $0x180] ss:$8 sps:$4 sm:$0xff]  }
 0x191   :  { %v3182_v37 = vpop.eup %3181  ;;  %v1601_v13 = vadd.f32 1.0, %v3180_v26  ;;  %v1845_v34 = vmul.f32 %v1781_v21, %v3720_v4  ;;  %v3808_v50 = vpop.f32.mrb[34].mxu1  ;;  %v3070_v4 = vld [vmem:[#allocation8 + $0x194] ss:$8 sps:$4 sm:$0xff]  }
 0x192   :  { %v3184_v40 = vpop.eup %3183  ;;  %3201 = vrcp.f32 %v1600_v47  ;;  %v1604_v48 = vadd.f32 1.0, %v3182_v37  ;;  %v1920_v18 = vpack.c.bf16 %v1844_v22, %v1840_v6  ;;  %v3810_v55 = vpop.f32.mrb[35].mxu1  ;;  %2448 = vmatpush1.bf16.msra.mxu0 %v3062_v11  ;;  %v3076_v26 = vld [vmem:[#allocation8 + $0x1b4] ss:$8 sps:$4 sm:$0xff]  }
 0x193   :  { %v3186_v63 = vpop.eup %3185  ;;  %3203 = vrcp.f32 %v1601_v13  ;;  %v1605_v52 = vadd.f32 1.0, %v3184_v40  ;;  %v1921_v54 = vpack.c.bf16 %v1845_v34, %v1841_v17  ;;  %2449 = vmatprep.subr.bf16.mxu0 %v3067_v30 }
 0x194   :  { %v3188_v20 = vpop.eup %3187  ;;  %v1784_v59 = vmul.f32 %v3186_v63, %v3718_v53  ;;  %3205 = vrcp.f32 %v1604_v48  ;;  %v3068_v53 = vld [vmem:[#allocation8 + $0x190] ss:$8 sps:$4 sm:$0xff]  }
 0x195   :  { %v3190_v12 = vpop.eup %3189  ;;  %v1785_v23 = vmul.f32 %v3188_v20, %v3723_v9  ;;  %3207 = vrcp.f32 %v1605_v52  ;;  %2392 = vmatprep.mubr.bf16.mxu0 %v1921_v54  ;;  %v3079_v54 = vld [vmem:[#allocation8 + $0x1c4] ss:$8 sps:$4 sm:$0xff]  }
 0x196   :  { %v3192_v32 = vpop.eup %3191  ;;  %v1788_v1 = vmul.f32 %v3190_v12, %v3726_v43  ;;  %v1848_v10 = vmul.f32 %v1784_v59, %v3734_v31  ;;  %2393 = vmatmul.mubr.bf16.gmra.mrb[48].mxu0 %v1920_v18  ;;  %v3073_v43 = vld [vmem:[#allocation8 + $0x1a4] ss:$8 sps:$4 sm:$0xff]   ;;  %v3074_v18 = vld [vmem:[#allocation8 + $0x1b0] ss:$8 sps:$4 sm:$0xff]   ;;  %v3077_v12 = vld [vmem:[#allocation8 + $0x1c0] ss:$8 sps:$4 sm:$0xff]  }
 0x197   :  { %v3194_v56 = vpop.eup %3193  ;;  %v1789_v35 = vmul.f32 %v3192_v32, %v3729_v16  ;;  %v1849_v62 = vmul.f32 %v1785_v23, %v3738_v44  ;;  %v3818_v61 = vpop.f32.mrb[36].mxu1  ;;  %2450 = vmatpush1.bf16.msra.mxu0 %v3065_v41  ;;  %v3082_v23 = vld [vmem:[#allocation8 + $0x1d4] ss:$8 sps:$4 sm:$0xff]  }
 0x198   :  { %v3196_v14 = vpop.eup %3195  ;;  %v1608_v2 = vadd.f32 1.0, %v3194_v56  ;;  %v1852_v9 = vmul.f32 %v1788_v1, %v3742_v49  ;;  %v3821_v29 = vpop.f32.mrb[37].mxu1  ;;  %2451 = vmatprep.subr.bf16.mxu0 %v3070_v4  ;;  %v3071_v49 = vld [vmem:[#allocation8 + $0x1a0] ss:$8 sps:$4 sm:$0xff]  }
 0x199   :  { %v3198_v58 = vpop.eup %3197  ;;  %v1609_v31 = vadd.f32 1.0, %v3196_v14  ;;  %v1853_v15 = vmul.f32 %v1789_v35, %v3747_v57  ;;  %v3824_v6 = vpop.f32.mrb[38].mxu1  ;;  %v2825_v14 = vmul.f32 -1.442695, %v3800_v25 }
 0x19a   :  { %v3200_v16 = vpop.eup %3199  ;;  %3209 = vrcp.f32 %v1608_v2  ;;  %v1612_v44 = vadd.f32 1.0, %v3198_v58  ;;  %v1924_v11 = vpack.c.bf16 %v1852_v9, %v1848_v10  ;;  %v3826_v8 = vpop.f32.mrb[39].mxu1  ;;  %v3083_v58 = vld [vmem:[#allocation8 + $0x1e0] ss:$8 sps:$4 sm:$0xff]  }
 0x19b   :  { %3211 = vrcp.f32 %v1609_v31  ;;  %v1613_v21 = vadd.f32 1.0, %v3200_v16  ;;  %v1925_v17 = vpack.c.bf16 %v1853_v15, %v1849_v62  ;;  %2452 = vmatpush1.bf16.msra.mxu0 %v3068_v53  ;;  %v2829_v31 = vmul.f32 -1.442695, %v3808_v50  ;;  %v3088_v15 = vld [vmem:[#allocation8 + $0x1f4] ss:$8 sps:$4 sm:$0xff]  }
 0x19c   :  { %v3202_v30 = vpop.eup %3201  ;;  %3213 = vrcp.f32 %v1612_v44  ;;  %2453 = vmatprep.subr.bf16.mxu0 %v3073_v43 }
 0x19d   :  { %v3204_v47 = vpop.eup %3203  ;;  %v1792_v57 = vmul.f32 %v3202_v30, %v3745_v28  ;;  %3215 = vrcp.f32 %v1613_v21  ;;  %2402 = vmatprep.mubr.bf16.mxu0 %v1925_v17  ;;  %v2834_v21 = vmul.f32 -1.442695, %v3821_v29 }
 0x19e   :  { %v3206_v22 = vpop.eup %3205  ;;  %v1793_v37 = vmul.f32 %v3204_v47, %v3750_v27  ;;  %2403 = vmatmul.mubr.bf16.gmra.mrb[52].mxu0 %v1924_v11  ;;  %3217 = vpow2.f32 %v2825_v14  ;;  %v3086_v11 = vld [vmem:[#allocation8 + $0x1f0] ss:$8 sps:$4 sm:$0xff]  }
 0x19f   :  { %v3208_v13 = vpop.eup %3207  ;;  %v1796_v34 = vmul.f32 %v3206_v22, %v3753_v46  ;;  %v1856_v40 = vmul.f32 %v1792_v57, %v3762_v19  ;;  %v3832_v48 = vpop.f32.mrb[40].mxu1  ;;  %2454 = vmatpush1.bf16.msra.mxu0 %v3071_v49  ;;  %v2837_v49 = vmul.f32 -1.442695, %v3824_v6 }
 0x1a0   :  { %v1797_v63 = vmul.f32 %v3208_v13, %v3756_v0  ;;  %v1857_v52 = vmul.f32 %v1793_v37, %v3766_v39  ;;  %v3836_v28 = vpop.f32.mrb[41].mxu1  ;;  %2455 = vmatprep.subr.bf16.mxu0 %v3076_v26  ;;  %v2838_v26 = vmul.f32 -1.442695, %v3826_v8  ;;  %v2841_v37 = vmul.f32 -1.442695, %v3832_v48 }
 0x1a1   :  { %v1860_v27 = vmul.f32 %v1796_v34, %v3770_v33  ;;  %v3839_v41 = vpop.f32.mrb[42].mxu1  ;;  %v2842_v34 = vmul.f32 -1.442695, %v3836_v28 }
 0x1a2   :  { %v1861_v46 = vmul.f32 %v1797_v63, %v3775_v38  ;;  %v3842_v20 = vpop.f32.mrb[43].mxu1 }
 0x1a3   :  { %v1928_v19 = vpack.c.bf16 %v1860_v27, %v1856_v40  ;;  %2456 = vmatpush1.bf16.msra.mxu0 %v3074_v18 }
 0x1a4   :  { %v3210_v59 = vpop.eup %3209  ;;  %v1929_v4 = vpack.c.bf16 %v1861_v46, %v1857_v52  ;;  %2457 = vmatprep.subr.bf16.mxu0 %v3079_v54  ;;  %v2845_v46 = vmul.f32 -1.442695, %v3839_v41 }
 0x1a5   :  { %v3212_v0 = vpop.eup %3211  ;;  %v1800_v39 = vmul.f32 %v3210_v59, %v3773_v45  ;;  %v3080_v45 = vld [vmem:[#allocation8 + $0x1d0] ss:$8 sps:$4 sm:$0xff]  }
 0x1a6   :  { %v3214_v32 = vpop.eup %3213  ;;  %v1801_v1 = vmul.f32 %v3212_v0, %v3778_v51  ;;  %2412 = vmatprep.mubr.bf16.mxu0 %v1929_v4 }
 0x1a7   :  { %v3216_v33 = vpop.eup %3215  ;;  %v1804_v10 = vmul.f32 %v3214_v32, %v3781_v3  ;;  %v1864_v38 = vmul.f32 %v1800_v39, %v3789_v42  ;;  %2413 = vmatmul.mubr.bf16.gmra.mrb[56].mxu0 %v1928_v19  ;;  %v3848_v56 = vpop.f32.mrb[44].mxu1  ;;  %v3085_v3 = vld [vmem:[#allocation8 + $0x1e4] ss:$8 sps:$4 sm:$0xff]   ;;  %v2826_v42 = vmul.f32 -1.442695, %v3805_v36 }
 0x1a8   :  { %v1805_v35 = vmul.f32 %v3216_v33, %v3784_v60  ;;  %v1865_v62 = vmul.f32 %v1801_v1, %v3792_v5  ;;  %v3852_v53 = vpop.f32.mrb[45].mxu1  ;;  %2458 = vmatpush1.bf16.msra.mxu0 %v3077_v12  ;;  %v3218_v47 = vpop.eup %3217  ;;  %v2846_v19 = vmul.f32 -1.442695, %v3842_v20  ;;  %v2849_v32 = vmul.f32 -1.442695, %v3848_v56 }
 0x1a9   :  { %v1868_v51 = vmul.f32 %v1804_v10, %v3796_v7  ;;  %v3856_v2 = vpop.f32.mrb[46].mxu1  ;;  %2459 = vmatprep.subr.bf16.mxu0 %v3082_v23  ;;  %3219 = vpow2.f32 %v2826_v42  ;;  %v2830_v7 = vmul.f32 -1.442695, %v3810_v55  ;;  %v1554_v18 = vadd.f32 1.0, %v3218_v47 }
 0x1aa   :  { %v1869_v9 = vmul.f32 %v1805_v35, %v3802_v24  ;;  %v3860_v43 = vpop.f32.mrb[47].mxu1  ;;  %v2833_v24 = vmul.f32 -1.442695, %v3818_v61  ;;  %3221 = vpow2.f32 %v2829_v31  ;;  %v2850_v14 = vmul.f32 -1.442695, %v3852_v53 }
 0x1ab   :  { %v1932_v60 = vpack.c.bf16 %v1868_v51, %v1864_v38  ;;  %3223 = vpow2.f32 %v2830_v7  ;;  %v2853_v51 = vmul.f32 -1.442695, %v3856_v2 }
 0x1ac   :  { %v1933_v5 = vpack.c.bf16 %v1869_v9, %v1865_v62  ;;  %2460 = vmatpush1.bf16.msra.mxu0 %v3080_v45  ;;  %3225 = vpow2.f32 %v2833_v24 }
 0x1ad   :  { %2461 = vmatprep.subr.bf16.mxu0 %v3085_v3  ;;  %3227 = vpow2.f32 %v2834_v21 }
 0x1ae   :  { %2422 = vmatprep.mubr.bf16.mxu0 %v1933_v5  ;;  %3229 = vpow2.f32 %v2837_v49 }
 0x1af   :  { %2423 = vmatmul.mubr.bf16.gmra.mrb[60].mxu0 %v1932_v60  ;;  %v3864_v16 = vpop.f32.mrb[48].mxu1  ;;  %3231 = vpow2.f32 %v2838_v26  ;;  %v2854_v60 = vmul.f32 -1.442695, %v3860_v43 }
 0x1b0   :  { %v3867_v44 = vpop.f32.mrb[49].mxu1  ;;  %2462 = vmatpush1.bf16.msra.mxu0 %v3083_v58  ;;  %3233 = vpow2.f32 %v2841_v37  ;;  %v2857_v31 = vmul.f32 -1.442695, %v3864_v16 }
 0x1b1   :  { %v3870_v17 = vpop.f32.mrb[50].mxu1  ;;  %2463 = vmatprep.subr.bf16.mxu0 %v3088_v15  ;;  %3235 = vpow2.f32 %v2842_v34 }
 0x1b2   :  { %v3873_v30 = vpop.f32.mrb[51].mxu1  ;;  %3237 = vrcp.f32 %v1554_v18  ;;  %v2861_v34 = vmul.f32 -1.442695, %v3870_v17 }
 0x1b3   :  { %v3220_v22 = vpop.eup %3219 }
 0x1b4   :  { %2464 = vmatpush1.bf16.msra.mxu0 %v3086_v11  ;;  %v3222_v52 = vpop.eup %3221  ;;  %v1555_v54 = vadd.f32 1.0, %v3220_v22  ;;  %v2858_v22 = vmul.f32 -1.442695, %v3867_v44 }
 0x1b5   :  { %v3224_v27 = vpop.eup %3223  ;;  %v1558_v4 = vadd.f32 1.0, %v3222_v52 }
 0x1b6   :  { %v3226_v59 = vpop.eup %3225  ;;  %3239 = vrcp.f32 %v1555_v54  ;;  %v1559_v0 = vadd.f32 1.0, %v3224_v27 }
 0x1b7   :  { %v3876_v57 = vpop.f32.mrb[52].mxu1  ;;  %v3228_v12 = vpop.eup %3227  ;;  %3241 = vpow2.f32 %v2845_v46  ;;  %v1562_v33 = vadd.f32 1.0, %v3226_v59 }
 0x1b8   :  { %v3879_v13 = vpop.f32.mrb[53].mxu1  ;;  %v3230_v23 = vpop.eup %3229  ;;  %3243 = vpow2.f32 %v2846_v19  ;;  %v1563_v38 = vadd.f32 1.0, %v3228_v12 }
 0x1b9   :  { %v3882_v40 = vpop.f32.mrb[54].mxu1  ;;  %3245 = vrcp.f32 %v1558_v4  ;;  %v3232_v62 = vpop.eup %3231  ;;  %v1566_v45 = vadd.f32 1.0, %v3230_v23  ;;  %v2862_v4 = vmul.f32 -1.442695, %v3873_v30 }
 0x1ba   :  { %v3884_v63 = vpop.f32.mrb[55].mxu1  ;;  %3247 = vrcp.f32 %v1559_v0  ;;  %v3234_v3 = vpop.eup %3233  ;;  %v1567_v42 = vadd.f32 1.0, %v3232_v62 }
 0x1bb   :  { %3249 = vpow2.f32 %v2849_v32  ;;  %v3236_v9 = vpop.eup %3235  ;;  %v1570_v24 = vadd.f32 1.0, %v3234_v3  ;;  %v2865_v32 = vmul.f32 -1.442695, %v3876_v57 }
 0x1bc   :  { %3251 = vrcp.f32 %v1562_v33  ;;  %v3238_v58 = vpop.eup %3237  ;;  %v1571_v49 = vadd.f32 1.0, %v3236_v9 }
 0x1bd   :  { %3253 = vrcp.f32 %v1563_v38  ;;  %v1746_v27 = vmul.f32 %v3238_v58, %v3800_v25 }
 0x1be   :  { %3255 = vrcp.f32 %v1566_v45  ;;  %v2866_v45 = vmul.f32 -1.442695, %v3879_v13 }
 0x1bf   :  { %v3888_v39 = vpop.f32.mrb[56].mxu1  ;;  %3257 = vpow2.f32 %v2850_v14 }
 0x1c0   :  { %v3891_v1 = vpop.f32.mrb[57].mxu1  ;;  %v3240_v7 = vpop.eup %3239  ;;  %3259 = vpow2.f32 %v2853_v51 }
 0x1c1   :  { %v3893_v10 = vpop.f32.mrb[58].mxu1  ;;  %v3242_v21 = vpop.eup %3241  ;;  %3261 = vrcp.f32 %v1567_v42  ;;  %v1747_v59 = vmul.f32 %v3240_v7, %v3805_v36 }
 0x1c2   :  { %v3895_v35 = vpop.f32.mrb[59].mxu1  ;;  %v3244_v47 = vpop.eup %3243  ;;  %3263 = vpow2.f32 %v2854_v60  ;;  %v1574_v52 = vadd.f32 1.0, %v3242_v21 }
 0x1c3   :  { %v3246_v37 = vpop.eup %3245  ;;  %3265 = vpow2.f32 %v2857_v31  ;;  %v1575_v46 = vadd.f32 1.0, %v3244_v47  ;;  %v2869_v31 = vmul.f32 -1.442695, %v3882_v40 }
 0x1c4   :  { %v3248_v18 = vpop.eup %3247  ;;  %3267 = vrcp.f32 %v1570_v24  ;;  %v1750_v23 = vmul.f32 %v3246_v37, %v3808_v50 }
 0x1c5   :  { %v3250_v54 = vpop.eup %3249  ;;  %3269 = vrcp.f32 %v1571_v49  ;;  %v1751_v25 = vmul.f32 %v3248_v18, %v3810_v55  ;;  %v2870_v18 = vmul.f32 -1.442695, %v3884_v63 }
 0x1c6   :  { %v3252_v19 = vpop.eup %3251  ;;  %3271 = vpow2.f32 %v2858_v22  ;;  %v1578_v60 = vadd.f32 1.0, %v3250_v54 }
 0x1c7   :  { %v3900_v5 = vpop.f32.mrb[60].mxu1  ;;  %v3254_v0 = vpop.eup %3253  ;;  %3273 = vpow2.f32 %v2861_v34  ;;  %v1754_v47 = vmul.f32 %v3252_v19, %v3818_v61 }
 0x1c8   :  { %v3903_v15 = vpop.f32.mrb[61].mxu1  ;;  %v3256_v62 = vpop.eup %3255  ;;  %3275 = vrcp.f32 %v1574_v52  ;;  %v1755_v34 = vmul.f32 %v3254_v0, %v3821_v29 }
 0x1c9   :  { %v3905_v11 = vpop.f32.mrb[62].mxu1  ;;  %v3258_v51 = vpop.eup %3257  ;;  %3277 = vrcp.f32 %v1575_v46 }
 0x1ca   :  { %v3907_v26 = vpop.f32.mrb[63].mxu1  ;;  %v3260_v9 = vpop.eup %3259  ;;  %3279 = vpow2.f32 %v2862_v4  ;;  %v1579_v55 = vadd.f32 1.0, %v3258_v51 }
 0x1cb   :  { %v3262_v58 = vpop.eup %3261  ;;  %3281 = vpow2.f32 %v2865_v32  ;;  %v1582_v22 = vadd.f32 1.0, %v3260_v9  ;;  %v2873_v32 = vmul.f32 -1.442695, %v3888_v39 }
 0x1cc   :  { %v3264_v24 = vpop.eup %3263  ;;  %3283 = vpow2.f32 %v2866_v45  ;;  %v1759_v61 = vmul.f32 %v3262_v58, %v3826_v8 }
 0x1cd   :  { %v3266_v49 = vpop.eup %3265  ;;  %3285 = vrcp.f32 %v1578_v60  ;;  %v1583_v46 = vadd.f32 1.0, %v3264_v24  ;;  %v2877_v60 = vmul.f32 -1.442695, %v3893_v10 }
 0x1ce   :  { %v3268_v37 = vpop.eup %3267  ;;  %3287 = vpow2.f32 %v2869_v31  ;;  %v1586_v19 = vadd.f32 1.0, %v3266_v49  ;;  %v2878_v31 = vmul.f32 -1.442695, %v3895_v35 }
 0x1cf   :  { %v1281_v12 = vpop.f32.mrb[64].mxu1  ;;  %v3270_v54 = vpop.eup %3269  ;;  %3289 = vrcp.f32 %v1579_v55  ;;  %v1762_v9 = vmul.f32 %v3268_v37, %v3832_v48 }
 0x1d0   :  { %v1810_v33 = vmul.f32 %v1746_v27, %v1281_v12  ;;  %v1283_v38 = vpop.f32.mrb[65].mxu1  ;;  %v1758_v27 = vmul.f32 %v3256_v62, %v3824_v6  ;;  %v3272_v12 = vpop.eup %3271  ;;  %3291 = vrcp.f32 %v1582_v22  ;;  %v2874_v6 = vmul.f32 -1.442695, %v3891_v1 }
 0x1d1   :  { %v1811_v14 = vmul.f32 %v1747_v59, %v1283_v38  ;;  %v1285_v36 = vpop.f32.mrb[66].mxu1  ;;  %v3274_v0 = vpop.eup %3273  ;;  %3293 = vpow2.f32 %v2870_v18  ;;  %v1763_v58 = vmul.f32 %v3270_v54, %v3836_v28 }
 0x1d2   :  { %v1814_v3 = vmul.f32 %v1750_v23, %v1285_v36  ;;  %v1287_v42 = vpop.f32.mrb[67].mxu1  ;;  %3295 = vrcp.f32 %v1583_v46  ;;  %v1590_v51 = vadd.f32 1.0, %v3274_v0  ;;  %v2885_v0 = vmul.f32 -1.442695, %v3905_v11 }
 0x1d3   :  { %v1815_v50 = vmul.f32 %v1751_v25, %v1287_v42  ;;  %v3276_v25 = vpop.eup %3275  ;;  %3297 = vrcp.f32 %v1586_v19 }
 0x1d4   :  { %v1906_v7 = vpack.c.bf16 %v1814_v3, %v1810_v33  ;;  %v3278_v45 = vpop.eup %3277  ;;  %3299 = vpow2.f32 %v2873_v32  ;;  %v1766_v24 = vmul.f32 %v3276_v25, %v3839_v41  ;;  %v2881_v41 = vmul.f32 -1.442695, %v3900_v5 }
 0x1d5   :  { %v1907_v21 = vpack.c.bf16 %v1815_v50, %v1811_v14  ;;  %v1587_v14 = vadd.f32 1.0, %v3272_v12  ;;  %v3280_v8 = vpop.eup %3279  ;;  %3301 = vpow2.f32 %v2874_v6  ;;  %v1767_v48 = vmul.f32 %v3278_v45, %v3842_v20 }
 0x1d6   :  { %v3282_v42 = vpop.eup %3281  ;;  %v1591_v55 = vadd.f32 1.0, %v3280_v8 }
 0x1d7   :  { %v1291_v52 = vpop.f32.mrb[68].mxu1  ;;  %2465 = vmatprep.mubr.bf16.mxu0 %v1907_v21  ;;  %v3284_v50 = vpop.eup %3283  ;;  %3303 = vrcp.f32 %v1587_v14  ;;  %v1594_v22 = vadd.f32 1.0, %v3282_v42 }
 0x1d8   :  { %v1818_v59 = vmul.f32 %v1754_v47, %v1291_v52  ;;  %v1293_v4 = vpop.f32.mrb[69].mxu1  ;;  %2466 = vmatmul.mubr.bf16.vlgmr.msra.gmra.mrb[32].mxu0 %v1906_v7  ;;  %v3286_v47 = vpop.eup %3285  ;;  %3305 = vrcp.f32 %v1590_v51  ;;  %v1595_v18 = vadd.f32 1.0, %v3284_v50 }
 0x1d9   :  { %v1819_v23 = vmul.f32 %v1755_v34, %v1293_v4  ;;  %v1295_v29 = vpop.f32.mrb[70].mxu1  ;;  %v3288_v28 = vpop.eup %3287  ;;  %3307 = vpow2.f32 %v2877_v60  ;;  %v2882_v4 = vmul.f32 -1.442695, %v3903_v15 }
 0x1da   :  { %v1822_v33 = vmul.f32 %v1758_v27, %v1295_v29  ;;  %v1297_v38 = vpop.f32.mrb[71].mxu1  ;;  %v3290_v27 = vpop.eup %3289  ;;  %3309 = vpow2.f32 %v2878_v31  ;;  %v1770_v29 = vmul.f32 %v3286_v47, %v3848_v56 }
 0x1db   :  { %v1823_v62 = vmul.f32 %v1759_v61, %v1297_v38  ;;  %3311 = vrcp.f32 %v1591_v55  ;;  %v1598_v61 = vadd.f32 1.0, %v3288_v28  ;;  %v2886_v38 = vmul.f32 -1.442695, %v3907_v26 }
 0x1dc   :  { %v1910_v36 = vpack.c.bf16 %v1822_v33, %v1818_v59  ;;  %v3292_v59 = vpop.eup %3291  ;;  %3313 = vrcp.f32 %v1594_v22  ;;  %v1771_v33 = vmul.f32 %v3290_v27, %v3852_v53 }
 0x1dd   :  { %v1911_v3 = vpack.c.bf16 %v1823_v62, %v1819_v23  ;;  %v3294_v20 = vpop.eup %3293  ;;  %3315 = vrcp.f32 %v1595_v18  ;;  %v1774_v62 = vmul.f32 %v3292_v59, %v3856_v2 }
 0x1de   :  { %v3296_v23 = vpop.eup %3295  ;;  %3317 = vpow2.f32 %v2881_v41  ;;  %v1599_v45 = vadd.f32 1.0, %v3294_v20 }
 0x1df   :  { %v1301_v7 = vpop.f32.mrb[72].mxu1  ;;  %2475 = vmatprep.mubr.bf16.mxu0 %v1911_v3  ;;  %v3298_v32 = vpop.eup %3297  ;;  %3319 = vpow2.f32 %v2882_v4  ;;  %v1775_v8 = vmul.f32 %v3296_v23, %v3860_v43 }
 0x1e0   :  { %v1826_v21 = vmul.f32 %v1762_v9, %v1301_v7  ;;  %v1303_v49 = vpop.f32.mrb[73].mxu1  ;;  %2476 = vmatmul.mubr.bf16.gmra.mrb[36].mxu0 %v1910_v36  ;;  %v3300_v6 = vpop.eup %3299  ;;  %3321 = vrcp.f32 %v1598_v61 }
 0x1e1   :  { %v1827_v37 = vmul.f32 %v1763_v58, %v1303_v49  ;;  %v1305_v34 = vpop.f32.mrb[74].mxu1  ;;  %v3302_v56 = vpop.eup %3301  ;;  %3323 = vpow2.f32 %v2885_v0  ;;  %v1602_v7 = vadd.f32 1.0, %v3300_v6 }
 0x1e2   :  { %v1830_v52 = vmul.f32 %v1766_v24, %v1305_v34  ;;  %v1307_v54 = vpop.f32.mrb[75].mxu1  ;;  %v3304_v53 = vpop.eup %3303  ;;  %3325 = vpow2.f32 %v2886_v38  ;;  %v1603_v43 = vadd.f32 1.0, %v3302_v56 }
 0x1e3   :  { %v1831_v46 = vmul.f32 %v1767_v48, %v1307_v54  ;;  %v3306_v60 = vpop.eup %3305  ;;  %3327 = vrcp.f32 %v1599_v45  ;;  %v1779_v47 = vmul.f32 %v3304_v53, %v3867_v44 }
 0x1e4   :  { %v1914_v12 = vpack.c.bf16 %v1830_v52, %v1826_v21  ;;  %v3308_v58 = vpop.eup %3307  ;;  %v1778_v21 = vmul.f32 %v3298_v32, %v3864_v16  ;;  %v1782_v34 = vmul.f32 %v3306_v60, %v3870_v17  ;;  %3329 = vrcp.f32 %v1602_v7 }
 0x1e5   :  { %v1915_v19 = vpack.c.bf16 %v1831_v46, %v1827_v37  ;;  %v3310_v31 = vpop.eup %3309  ;;  %v1606_v48 = vadd.f32 1.0, %v3308_v58  ;;  %3331 = vrcp.f32 %v1603_v43 }
 0x1e6   :  { %v3312_v55 = vpop.eup %3311  ;;  %v1607_v28 = vadd.f32 1.0, %v3310_v31 }
 0x1e7   :  { %v1311_v25 = vpop.f32.mrb[76].mxu1  ;;  %2485 = vmatprep.mubr.bf16.mxu0 %v1915_v19  ;;  %v3314_v49 = vpop.eup %3313  ;;  %v1783_v27 = vmul.f32 %v3312_v55, %v3873_v30  ;;  %3333 = vrcp.f32 %v1606_v48 }
 0x1e8   :  { %v1834_v14 = vmul.f32 %v1770_v29, %v1311_v25  ;;  %v1313_v36 = vpop.f32.mrb[77].mxu1  ;;  %2486 = vmatmul.mubr.bf16.gmra.mrb[40].mxu0 %v1914_v12  ;;  %v3316_v37 = vpop.eup %3315  ;;  %3335 = vrcp.f32 %v1607_v28  ;;  %v1786_v0 = vmul.f32 %v3314_v49, %v3876_v57 }
 0x1e9   :  { %v1835_v51 = vmul.f32 %v1771_v33, %v1313_v36  ;;  %v1315_v3 = vpop.f32.mrb[78].mxu1  ;;  %v3318_v54 = vpop.eup %3317  ;;  %v1787_v32 = vmul.f32 %v3316_v37, %v3879_v13 }
 0x1ea   :  { %v1838_v42 = vmul.f32 %v1774_v62, %v1315_v3  ;;  %v1317_v9 = vpop.f32.mrb[79].mxu1  ;;  %v3320_v46 = vpop.eup %3319  ;;  %v1610_v19 = vadd.f32 1.0, %v3318_v54 }
 0x1eb   :  { %v1839_v50 = vmul.f32 %v1775_v8, %v1317_v9  ;;  %v3322_v4 = vpop.eup %3321  ;;  %v1611_v30 = vadd.f32 1.0, %v3320_v46 }
 0x1ec   :  { %v1918_v2 = vpack.c.bf16 %v1838_v42, %v1834_v14  ;;  %v3324_v20 = vpop.eup %3323  ;;  %v1790_v25 = vmul.f32 %v3322_v4, %v3882_v40  ;;  %3337 = vrcp.f32 %v1610_v19 }
 0x1ed   :  { %v1919_v24 = vpack.c.bf16 %v1839_v50, %v1835_v51  ;;  %v3326_v61 = vpop.eup %3325  ;;  %v1614_v33 = vadd.f32 1.0, %v3324_v20  ;;  %3339 = vrcp.f32 %v1611_v30 }
 0x1ee   :  { %v3328_v29 = vpop.eup %3327  ;;  %v1615_v6 = vadd.f32 1.0, %v3326_v61 }
 0x1ef   :  { %v1321_v22 = vpop.f32.mrb[80].mxu1  ;;  %2495 = vmatprep.mubr.bf16.mxu0 %v1919_v24  ;;  %v1791_v14 = vmul.f32 %v3328_v29, %v3884_v63  ;;  %v3330_v51 = vpop.eup %3329  ;;  %3341 = vrcp.f32 %v1614_v33 }
 0x1f0   :  { %v1842_v18 = vmul.f32 %v1778_v21, %v1321_v22  ;;  %v1323_v52 = vpop.f32.mrb[81].mxu1  ;;  %2496 = vmatmul.mubr.bf16.gmra.mrb[44].mxu0 %v1918_v2  ;;  %v3332_v3 = vpop.eup %3331  ;;  %3343 = vrcp.f32 %v1615_v6  ;;  %v1794_v60 = vmul.f32 %v3330_v51, %v3888_v39 }
 0x1f1   :  { %v1843_v41 = vmul.f32 %v1779_v47, %v1323_v52  ;;  %v1325_v16 = vpop.f32.mrb[82].mxu1  ;;  %v3334_v42 = vpop.eup %3333  ;;  %v1795_v50 = vmul.f32 %v3332_v3, %v3891_v1 }
 0x1f2   :  { %v1846_v59 = vmul.f32 %v1782_v34, %v1325_v16  ;;  %v1327_v44 = vpop.f32.mrb[83].mxu1  ;;  %v3336_v9 = vpop.eup %3335  ;;  %v1798_v58 = vmul.f32 %v3334_v42, %v3893_v10 }
 0x1f3   :  { %v1847_v12 = vmul.f32 %v1783_v27, %v1327_v44  ;;  %v1799_v7 = vmul.f32 %v3336_v9, %v3895_v35 }
 0x1f4   :  { %v1922_v17 = vpack.c.bf16 %v1846_v59, %v1842_v18 }
 0x1f5   :  { %v1923_v23 = vpack.c.bf16 %v1847_v12, %v1843_v41 }
 0x1f6   :  { %v3338_v49 = vpop.eup %3337 }
 0x1f7   :  { %v1331_v38 = vpop.f32.mrb[84].mxu1  ;;  %2505 = vmatprep.mubr.bf16.mxu0 %v1923_v23  ;;  %v3340_v48 = vpop.eup %3339  ;;  %v1802_v34 = vmul.f32 %v3338_v49, %v3900_v5 }
 0x1f8   :  { %v1850_v62 = vmul.f32 %v1786_v0, %v1331_v38  ;;  %v1333_v45 = vpop.f32.mrb[85].mxu1  ;;  %2506 = vmatmul.mubr.bf16.gmra.mrb[48].mxu0 %v1922_v17  ;;  %v1803_v10 = vmul.f32 %v3340_v48, %v3903_v15 }
 0x1f9   :  { %v1851_v36 = vmul.f32 %v1787_v32, %v1333_v45  ;;  %v1335_v56 = vpop.f32.mrb[86].mxu1  ;;  %v3342_v39 = vpop.eup %3341 }
 0x1fa   :  { %v1854_v8 = vmul.f32 %v1790_v25, %v1335_v56  ;;  %v1337_v57 = vpop.f32.mrb[87].mxu1  ;;  %v3344_v1 = vpop.eup %3343  ;;  %v1806_v18 = vmul.f32 %v3342_v39, %v3905_v11 }
 0x1fb   :  { %v1855_v13 = vmul.f32 %v1791_v14, %v1337_v57  ;;  %v1807_v54 = vmul.f32 %v3344_v1, %v3907_v26 }
 0x1fc   :  { %v1926_v53 = vpack.c.bf16 %v1854_v8, %v1850_v62 }
 0x1fd   :  { %v1927_v40 = vpack.c.bf16 %v1855_v13, %v1851_v36 }
 0x1ff   :  { %v1341_v63 = vpop.f32.mrb[88].mxu1  ;;  %2515 = vmatprep.mubr.bf16.mxu0 %v1927_v40 }
 0x200   :  { %v1858_v2 = vmul.f32 %v1794_v60, %v1341_v63  ;;  %v1343_v31 = vpop.f32.mrb[89].mxu1  ;;  %2516 = vmatmul.mubr.bf16.gmra.mrb[52].mxu0 %v1926_v53 }
 0x201   :  { %v1859_v24 = vmul.f32 %v1795_v50, %v1343_v31  ;;  %v1345_v55 = vpop.f32.mrb[90].mxu1 }
 0x202   :  { %v1862_v21 = vmul.f32 %v1798_v58, %v1345_v55  ;;  %v1347_v43 = vpop.f32.mrb[91].mxu1 }
 0x203   :  { %v1863_v47 = vmul.f32 %v1799_v7, %v1347_v43 }
 0x204   :  { %v1930_v22 = vpack.c.bf16 %v1862_v21, %v1858_v2 }
 0x205   :  { %v1931_v37 = vpack.c.bf16 %v1863_v47, %v1859_v24 }
 0x207   :  { %v1351_v28 = vpop.f32.mrb[92].mxu1  ;;  %2525 = vmatprep.mubr.bf16.mxu0 %v1931_v37 }
 0x208   :  { %v1866_v35 = vmul.f32 %v1802_v34, %v1351_v28  ;;  %v1353_v52 = vpop.f32.mrb[93].mxu1  ;;  %2526 = vmatmul.mubr.bf16.gmra.mrb[56].mxu0 %v1930_v22 }
 0x209   :  { %v1867_v27 = vmul.f32 %v1803_v10, %v1353_v52  ;;  %v1355_v41 = vpop.f32.mrb[94].mxu1 }
 0x20a   :  { %v1870_v16 = vmul.f32 %v1806_v18, %v1355_v41  ;;  %v1357_v46 = vpop.f32.mrb[95].mxu1 }
 0x20b   :  { %v1871_v59 = vmul.f32 %v1807_v54, %v1357_v46 }
 0x20c   :  { %v1934_v44 = vpack.c.bf16 %v1870_v16, %v1866_v35 }
 0x20d   :  { %v1935_v4 = vpack.c.bf16 %v1871_v59, %v1867_v27 }
 0x20f   :  { %2535 = vmatprep.mubr.bf16.mxu0 %v1935_v4 }
 0x210   :  { %2536 = vmatmul.mubr.bf16.gmra.mrb[60].mxu0 %v1934_v44 }
 0x2ab   :  { %v2467_v5 = vpop.f32.mrb[32].mxu0 }
 0x2ac   :  { %2645 = vst [vmem:[#allocation9] sm:$0xff] %v2467_v5  ;;  %v2469_v15 = vpop.f32.mrb[33].mxu0 }
 0x2ad   :  { %2646 = vst [vmem:[#allocation9 + $0x8] sm:$0xff] %v2469_v15  ;;  %v2471_v12 = vpop.f32.mrb[34].mxu0 }
 0x2ae   :  { %2647 = vst [vmem:[#allocation9 + $0x10] sm:$0xff] %v2471_v12  ;;  %v2473_v11 = vpop.f32.mrb[35].mxu0 }
 0x2af   :  { %2648 = vst [vmem:[#allocation9 + $0x18] sm:$0xff] %v2473_v11 }
 0x2b3   :  { %v2477_v20 = vpop.f32.mrb[36].mxu0 }
 0x2b4   :  { %2649 = vst [vmem:[#allocation9 + $0x20] sm:$0xff] %v2477_v20  ;;  %v2479_v26 = vpop.f32.mrb[37].mxu0 }
 0x2b5   :  { %2650 = vst [vmem:[#allocation9 + $0x28] sm:$0xff] %v2479_v26  ;;  %v2481_v17 = vpop.f32.mrb[38].mxu0 }
 0x2b6   :  { %2651 = vst [vmem:[#allocation9 + $0x30] sm:$0xff] %v2481_v17  ;;  %v2483_v61 = vpop.f32.mrb[39].mxu0 }
 0x2b7   :  { %2652 = vst [vmem:[#allocation9 + $0x38] sm:$0xff] %v2483_v61 }
 0x2bb   :  { %v2487_v19 = vpop.f32.mrb[40].mxu0 }
 0x2bc   :  { %2653 = vst [vmem:[#allocation9 + $0x40] sm:$0xff] %v2487_v19  ;;  %v2489_v23 = vpop.f32.mrb[41].mxu0 }
 0x2bd   :  { %2654 = vst [vmem:[#allocation9 + $0x48] sm:$0xff] %v2489_v23  ;;  %v2491_v29 = vpop.f32.mrb[42].mxu0 }
 0x2be   :  { %2655 = vst [vmem:[#allocation9 + $0x50] sm:$0xff] %v2491_v29  ;;  %v2493_v0 = vpop.f32.mrb[43].mxu0 }
 0x2bf   :  { %2656 = vst [vmem:[#allocation9 + $0x58] sm:$0xff] %v2493_v0 }
 0x2c3   :  { %v2497_v30 = vpop.f32.mrb[44].mxu0 }
 0x2c4   :  { %2657 = vst [vmem:[#allocation9 + $0x60] sm:$0xff] %v2497_v30  ;;  %v2499_v32 = vpop.f32.mrb[45].mxu0 }
 0x2c5   :  { %2658 = vst [vmem:[#allocation9 + $0x68] sm:$0xff] %v2499_v32  ;;  %v2501_v33 = vpop.f32.mrb[46].mxu0 }
 0x2c6   :  { %2659 = vst [vmem:[#allocation9 + $0x70] sm:$0xff] %v2501_v33  ;;  %v2503_v38 = vpop.f32.mrb[47].mxu0 }
 0x2c7   :  { %2660 = vst [vmem:[#allocation9 + $0x78] sm:$0xff] %v2503_v38 }
 0x2cb   :  { %v2507_v25 = vpop.f32.mrb[48].mxu0 }
 0x2cc   :  { %2661 = vst [vmem:[#allocation9 + $0x80] sm:$0xff] %v2507_v25  ;;  %v2509_v6 = vpop.f32.mrb[49].mxu0 }
 0x2cd   :  { %2662 = vst [vmem:[#allocation9 + $0x88] sm:$0xff] %v2509_v6  ;;  %v2511_v62 = vpop.f32.mrb[50].mxu0 }
 0x2ce   :  { %2663 = vst [vmem:[#allocation9 + $0x90] sm:$0xff] %v2511_v62  ;;  %v2513_v45 = vpop.f32.mrb[51].mxu0 }
 0x2cf   :  { %2664 = vst [vmem:[#allocation9 + $0x98] sm:$0xff] %v2513_v45 }
 0x2d3   :  { %v2517_v14 = vpop.f32.mrb[52].mxu0 }
 0x2d4   :  { %2665 = vst [vmem:[#allocation9 + $0xa0] sm:$0xff] %v2517_v14  ;;  %v2519_v36 = vpop.f32.mrb[53].mxu0 }
 0x2d5   :  { %2666 = vst [vmem:[#allocation9 + $0xa8] sm:$0xff] %v2519_v36  ;;  %v2521_v56 = vpop.f32.mrb[54].mxu0 }
 0x2d6   :  { %2667 = vst [vmem:[#allocation9 + $0xb0] sm:$0xff] %v2521_v56  ;;  %v2523_v8 = vpop.f32.mrb[55].mxu0 }
 0x2d7   :  { %2668 = vst [vmem:[#allocation9 + $0xb8] sm:$0xff] %v2523_v8 }
 0x2db   :  { %v2527_v57 = vpop.f32.mrb[56].mxu0 }
 0x2dc   :  { %2669 = vst [vmem:[#allocation9 + $0xc0] sm:$0xff] %v2527_v57  ;;  %v2529_v51 = vpop.f32.mrb[57].mxu0 }
 0x2dd   :  { %2670 = vst [vmem:[#allocation9 + $0xc8] sm:$0xff] %v2529_v51  ;;  %v2531_v13 = vpop.f32.mrb[58].mxu0 }
 0x2de   :  { %2671 = vst [vmem:[#allocation9 + $0xd0] sm:$0xff] %v2531_v13  ;;  %v2533_v3 = vpop.f32.mrb[59].mxu0 }
 0x2df   :  { %2672 = vst [vmem:[#allocation9 + $0xd8] sm:$0xff] %v2533_v3 }
 0x2e3   :  { %v2537_v53 = vpop.f32.mrb[60].mxu0 }
 0x2e4   :  { %2673 = vst [vmem:[#allocation9 + $0xe0] sm:$0xff] %v2537_v53  ;;  %v2539_v42 = vpop.f32.mrb[61].mxu0 }
 0x2e5   :  { %2674 = vst [vmem:[#allocation9 + $0xe8] sm:$0xff] %v2539_v42  ;;  %v2541_v40 = vpop.f32.mrb[62].mxu0 }
 0x2e6   :  { %2675 = vst [vmem:[#allocation9 + $0xf0] sm:$0xff] %v2541_v40  ;;  %v2543_v9 = vpop.f32.mrb[63].mxu0 }
 0x2e7   :  { %2676 = vst [vmem:[#allocation9 + $0xf8] sm:$0xff] %v2543_v9 }
 0x2e8   :  { %3422 = shalt.err (!%p3419_p0)
}
 0x2e9   :  { %s3423_s29 = scalar_lea.hbm %s3974_s3, 4096 }
 0x2ea   :  { %p3424_p1 = scmp.ne.s32.totalorder %s3974_s3, %s3423_s29  ;;  %p3427_p2 = scmp.lt.u32.totalorder %s3423_s29, %s3974_s3 }
 0x2ec   :  { %p3429_p3 = pnand %p3427_p2, %p3424_p1 }
 0x2ee   :  { %3432 = shalt.err (!%p3429_p3)
}
 0x2ef   :  { %2688 = dma.vmem_to_hbm [thread:$0]  %s2683_s25, 4096, %s3974_s3, [#allocation5], %s3443_s1, %s3443_s1, %s3444_s9  }
 0x2f0   :  { %3437 = dma.done.wait [#allocation5], 4096  }
 0x2f1   :  { %3438 = vsyncadd [#allocation5], 4294963200 }
 0x2f2   :  { %2692 = vsyncpa [#allocation4], 1 }
 0x2f3   :  { %2693 = vsyncpa [#allocation7], 1 }
 0x2f4   :  { %2694 = vsyncpa [#allocation5], 1 }

</bundles_post_ra>
